<compile_context>
chip_gen: v7x
topology: tpu7x:2x2x1
jax: 0.10.0
libtpu: 0.0.40
codegen_flags: <defaults>
</compile_context>

<pallas_src>
import functools

import jax
import jax.numpy as jnp
from jax.experimental import pallas as pl
from jax.experimental.pallas import tpu as pltpu


# ----------------------------------------------------------------------------
# Kernel: one (batch shard, T-chunk) grid step of the decode recurrence.
# ----------------------------------------------------------------------------
def _decoder_chunk_kernel(ge_ref, h0_ref, enc_ref, pk_ref, bias_ref,
                          v_ref, w_h_ref, w_c_ref, wp_h_ref, bih_ref, bhh_ref,
                          dec_ref, pre_ref, hfin_ref,
                          h_ref, *, unroll):
    f32 = jnp.float32
    bf16 = jnp.bfloat16
    H = h0_ref.shape[1]
    TC = ge_ref.shape[0]                  # timesteps in this chunk
    tanh_dtype = pk_ref.dtype             # bf16 on v6e/v7x, f32 on v5-class

    # (Re)initialize the carried hidden state at the first T-chunk of each
    # batch shard (T is the inner, "arbitrary" grid axis).
    @pl.when(pl.program_id(1) == 0)
    def _():
        h_ref[...] = h0_ref[...]

    def step(t, h):
        h_b = h.astype(bf16)

        # Fused h_prev dot: attention query projection + GRU hidden gates.
        h_all = jnp.dot(h_b, w_h_ref[...], preferred_element_type=f32)  # [Bs,4H]
        q = h_all[:, :H]                                                 # [Bs, H]

        # Bahdanau attention (VPU mul + XLU reduce; no M=1 matmuls).
        e = jnp.tanh(q.astype(tanh_dtype)[:, None, :] + pk_ref[...])     # [Bs,S,H]
        scores = jnp.sum(e.astype(f32) * v_ref[...][None, :, :], axis=-1)  # [Bs,S]
        scores = scores + bias_ref[...]                                  # mask bias
        scores = scores - jnp.max(scores, axis=-1, keepdims=True)
        p = jnp.exp(scores)
        alphas = p * pl.reciprocal(jnp.sum(p, axis=-1, keepdims=True),
                                   approx=True)                          # [Bs,S]
        context = jnp.sum(alphas[:, :, None] * enc_ref[...].astype(f32),
                          axis=1)                                        # [Bs,2H]
        ctx_b = context.astype(bf16)

        # Fused context dot: GRU-input context part + pre-output context part.
        c_all = jnp.dot(ctx_b, w_c_ref[...], preferred_element_type=f32)  # [Bs,4H]

        # Precomputed (hoisted) embedding contributions for this timestep.
        ge = ge_ref[t]                                                   # [Bs,4H]

        # Conditional GRU cell (PyTorch gate order r|z|n).
        gi = ge[:, :3 * H] + c_all[:, :3 * H] + bih_ref[...]             # [Bs,3H]
        gh = h_all[:, H:] + bhh_ref[...]                                 # [Bs,3H]
        r = jax.nn.sigmoid(gi[:, :H] + gh[:, :H])
        z = jax.nn.sigmoid(gi[:, H:2 * H] + gh[:, H:2 * H])
        n = jnp.tanh(gi[:, 2 * H:] + r * gh[:, 2 * H:])
        h_new = (1.0 - z) * n + z * h                                    # [Bs,H] f32

        # Pre-output Linear([emb; output; context]) (bias-free, split/fused).
        pre = (ge[:, 3 * H:] + c_all[:, 3 * H:]
               + jnp.dot(h_new.astype(bf16), wp_h_ref[...],
                         preferred_element_type=f32))                    # [Bs,H]

        dec_ref[t] = h_new
        pre_ref[t] = pre
        return h_new

    h_last = jax.lax.fori_loop(0, TC, step, h_ref[...], unroll=unroll)
    h_ref[...] = h_last          # carry across T-chunks
    hfin_ref[...] = h_last       # resident output; HBM writeback once per shard


# ----------------------------------------------------------------------------
# Pallas wrapper
# ----------------------------------------------------------------------------
def run_decoder_kernel(ge, h0, enc, pk, bias, v, w_h, w_c, wp_h, bih, bhh,
                       *, n_batch_shards, t_chunk, unroll):
    T, B, G = ge.shape              # G = 4H
    S = enc.shape[1]
    H = h0.shape[1]
    Bs = B // n_batch_shards
    NT = T // t_chunk

    kernel = functools.partial(_decoder_chunk_kernel, unroll=unroll)

    def const(shape):
        return pl.BlockSpec(shape, lambda bi, ti: (0,) * len(shape))

    def per_b(shape):
        return pl.BlockSpec(shape, lambda bi, ti, _n=len(shape): (bi,) + (0,) * (_n - 1))

    in_specs = [
        pl.BlockSpec((t_chunk, Bs, G), lambda bi, ti: (ti, bi, 0)),   # ge (emb dots)
        per_b((Bs, H)),                                               # h0
        per_b((Bs, S, 2 * H)),                                        # encoder_hidden
        per_b((Bs, S, H)),                                            # proj_key
        per_b((Bs, S)),                                               # mask bias
        const((1, H)),                                                # v (energy layer)
        const((H, 4 * H)),                                            # [Wq^T | W_hh^T]
        const((2 * H, 4 * H)),                                        # [Wih_ctx^T | Wpre_ctx^T]
        const((H, H)),                                                # Wpre_out^T
        const((1, 3 * H)),                                            # b_ih
        const((1, 3 * H)),                                            # b_hh
    ]
    out_specs = (
        pl.BlockSpec((t_chunk, Bs, H), lambda bi, ti: (ti, bi, 0)),   # decoder states
        pl.BlockSpec((t_chunk, Bs, H), lambda bi, ti: (ti, bi, 0)),   # pre-output
        per_b((Bs, H)),                                               # final hidden
    )

    return pl.pallas_call(
        kernel,
        out_shape=(jax.ShapeDtypeStruct((T, B, H), jnp.float32),
                   jax.ShapeDtypeStruct((T, B, H), jnp.float32),
                   jax.ShapeDtypeStruct((B, H), jnp.float32)),
        grid=(n_batch_shards, NT),
        in_specs=in_specs,
        out_specs=out_specs,
        scratch_shapes=[pltpu.VMEM((Bs, H), jnp.float32)],            # carried h
        compiler_params=pltpu.CompilerParams(
            dimension_semantics=("parallel", "arbitrary"),
            vmem_limit_bytes=48 * 1024 * 1024),
    )(ge, h0, enc, pk, bias, v, w_h, w_c, wp_h, bih, bhh)


# ----------------------------------------------------------------------------
# forward(trg_embed, encoder_hidden, encoder_final, src_mask, trg_mask,
#         hidden=None, max_len=None)
#   -> (decoder_states [B,T,H], hidden [1,B,H], pre_output [B,T,H])
# ----------------------------------------------------------------------------
def decoder_forward(params, trg_embed, encoder_hidden, encoder_final,
                    src_mask, trg_mask, hidden=None, max_len=None):
    p = params
    B, S, D2 = encoder_hidden.shape
    H = D2 // 2
    E = trg_embed.shape[-1]
    if max_len is None:
        max_len = trg_mask.shape[-1]
    T = int(max_len)

    f32, bf16 = jnp.float32, jnp.bfloat16
    tr = jnp.transpose

    # bf16 attention-energy math only where the EUP/VPU support it (v6e/v7x).
    try:
        kind = jax.devices()[0].device_kind.lower()
    except Exception:
        kind = ""
    energy_dtype = bf16 if ("v6" in kind or "v7" in kind) else f32

    # ---- one-shot glue (outside the kernel) ----
    if hidden is None:
        h0 = jnp.tanh(encoder_final[0] @ p['Wb'].T + p['bb']).astype(f32)    # [B,H]
    else:
        h0 = hidden[0].astype(f32)

    proj_key = (encoder_hidden @ p['Wk'].T).astype(energy_dtype)             # [B,S,H]
    bias = jnp.where(src_mask[:, 0, :], 0.0, -1e9).astype(f32)               # [B,S]
    embT = tr(trg_embed[:, :T, :], (1, 0, 2))                                # [T,B,E]

    # ---- split & fuse the concatenated weights ONCE ----
    wih = p['W_ih']                      # [3H, E+2H]   GRU input = [emb ; context]
    wp = p['W_pre']                      # [H, E+H+2H]  pre-out input = [emb ; out ; ctx]
    wih_e, wih_c = tr(wih[:, :E]), tr(wih[:, E:])          # [E,3H], [2H,3H]
    wp_e, wp_h, wp_c = tr(wp[:, :E]), tr(wp[:, E:E + H]), tr(wp[:, E + H:])

    w_e = jnp.concatenate([wih_e, wp_e], axis=1).astype(bf16)                # [E, 4H]
    w_h = jnp.concatenate([tr(p['Wq']), tr(p['W_hh'])], axis=1).astype(bf16) # [H, 4H]
    w_c = jnp.concatenate([wih_c, wp_c], axis=1).astype(bf16)                # [2H,4H]

    # Hoisted, h-independent embedding contributions for the WHOLE sequence:
    # one large MXU matmul instead of two tiny dependent dots per timestep.
    ge = jnp.dot(embT.reshape(T * B, E).astype(bf16), w_e,
                 preferred_element_type=f32).reshape(T, B, 4 * H)            # [T,B,4H]

    # ---- chunking / sharding heuristics ----
    t_chunk = next(c for c in (32, 16, 8, 4, 2, 1)
                   if T % c == 0 and c <= max(T // 2, 1))
    n_batch_shards = 2 if (B % 16 == 0) else 1        # v7x: 2 TCs; no-op elsewhere
    unroll = True if t_chunk <= 8 else 4

    dec_tm, pre_tm, h_last = run_decoder_kernel(
        ge, h0,
        encoder_hidden.astype(bf16), proj_key, bias,
        p['v'].astype(f32),
        w_h, w_c, wp_h.astype(bf16),
        p['b_ih'][None, :].astype(f32), p['b_hh'][None, :].astype(f32),
        n_batch_shards=n_batch_shards, t_chunk=t_chunk, unroll=unroll)

    decoder_states = tr(dec_tm, (1, 0, 2))    # [B,T,H]
    pre_output = tr(pre_tm, (1, 0, 2))        # [B,T,H]
    return decoder_states, h_last[None], pre_output


# ----------------------------------------------------------------------------
# Deterministic synthetic parameters (PyTorch-shaped)
# ----------------------------------------------------------------------------
def make_params(key, emb_size, hidden_size):
    E, H = emb_size, hidden_size
    ks = jax.random.split(key, 10)

    def w(k, shape, scale=0.1):
        return (scale * jax.random.normal(k, shape)).astype(jnp.float32)

    p = {}
    # GRU(emb + 2H -> H), PyTorch gate order r|z|n
    p['W_ih'] = w(ks[0], (3 * H, E + 2 * H))
    p['W_hh'] = w(ks[1], (3 * H, H))
    p['b_ih'] = w(ks[2], (3 * H,))
    p['b_hh'] = w(ks[3], (3 * H,))
    # bridge Linear(2H, H)
    p['Wb'] = w(ks[4], (H, 2 * H))
    p['bb'] = w(ks[5], (H,))
    # Bahdanau attention (bias-free): key(2H->H), query(H->H), energy(H->1)
    p['Wk'] = w(ks[6], (H, 2 * H))
    p['Wq'] = w(ks[7], (H, H))
    p['v'] = w(ks[8], (1, H))
    # pre-output Linear(E + H + 2H -> H, bias=False)
    p['W_pre'] = w(ks[9], (H, E + 3 * H))
    return p


if __name__ == "__main__":
    key = jax.random.PRNGKey(0)
    B, S, T = 2, 8, 8
    E, H = 32, 32

    k_par, k_trg, k_enc, k_fin = jax.random.split(key, 4)
    params = make_params(k_par, E, H)

    trg_embed = (0.1 * jax.random.normal(k_trg, (B, T, E))).astype(jnp.float32)
    encoder_hidden = (0.1 * jax.random.normal(k_enc, (B, S, 2 * H))).astype(jnp.float32)
    encoder_final = (0.1 * jax.random.normal(k_fin, (1, B, 2 * H))).astype(jnp.float32)

    src_lengths = jnp.array([8, 5], dtype=jnp.int32)
    trg_lengths = jnp.array([8, 6], dtype=jnp.int32)
    src_mask = (jnp.arange(S)[None, :] < src_lengths[:, None])[:, None, :]   # [B,1,S]
    trg_mask = (jnp.arange(T)[None, :] < trg_lengths[:, None])[:, None, :]   # [B,1,T]

    out = decoder_forward(params, trg_embed, encoder_hidden, encoder_final,
                          src_mask, trg_mask)
    jax.block_until_ready(out)
    dec_states, hidden, pre_out = out
    assert dec_states.shape == (B, T, H)
    assert hidden.shape == (1, B, H)
    assert pre_out.shape == (B, T, H)
    print("KERNEL_OK")
</pallas_src>

<mosaic_0001>
module attributes {stable_mosaic.version = 11 : i64} {
  func.func @_decoder_chunk_kernel(%arg0: i32, %arg1: i32, %arg2: memref<4x2x128xf32, #tpu.memory_space<vmem>>, %arg3: memref<2x32xf32, #tpu.memory_space<vmem>>, %arg4: memref<2x8x64xbf16, #tpu.memory_space<vmem>>, %arg5: memref<2x8x32xf32, #tpu.memory_space<vmem>>, %arg6: memref<2x8xf32, #tpu.memory_space<vmem>>, %arg7: memref<1x32xf32, #tpu.memory_space<vmem>>, %arg8: memref<32x128xbf16, #tpu.memory_space<vmem>>, %arg9: memref<64x128xbf16, #tpu.memory_space<vmem>>, %arg10: memref<32x32xbf16, #tpu.memory_space<vmem>>, %arg11: memref<1x96xf32, #tpu.memory_space<vmem>>, %arg12: memref<1x96xf32, #tpu.memory_space<vmem>>, %arg13: memref<4x2x32xf32, #tpu.memory_space<vmem>>, %arg14: memref<4x2x32xf32, #tpu.memory_space<vmem>>, %arg15: memref<2x32xf32, #tpu.memory_space<vmem>>, %arg16: memref<2x32xf32, #tpu.memory_space<vmem>>) attributes {dimension_semantics = [#tpu.dimension_semantics<parallel>, #tpu.dimension_semantics<arbitrary>], iteration_bounds = array<i64: 1, 2>, scalar_prefetch = 0 : i64, scratch_operands = 1 : i64, tpu.core_type = #tpu.core_type<tc>, window_params = [{transform_indices = @transform_0, window_bounds = array<i64: 4, 2, 128>}, {transform_indices = @transform_1, window_bounds = array<i64: 2, 32>}, {transform_indices = @transform_2, window_bounds = array<i64: 2, 8, 64>}, {transform_indices = @transform_3, window_bounds = array<i64: 2, 8, 32>}, {transform_indices = @transform_4, window_bounds = array<i64: 2, 8>}, {pipeline_mode = #tpu.pipeline_mode<synchronous>, transform_indices = @transform_5, window_bounds = array<i64: 1, 32>}, {pipeline_mode = #tpu.pipeline_mode<synchronous>, transform_indices = @transform_6, window_bounds = array<i64: 32, 128>}, {pipeline_mode = #tpu.pipeline_mode<synchronous>, transform_indices = @transform_7, window_bounds = array<i64: 64, 128>}, {pipeline_mode = #tpu.pipeline_mode<synchronous>, transform_indices = @transform_8, window_bounds = array<i64: 32, 32>}, {pipeline_mode = #tpu.pipeline_mode<synchronous>, transform_indices = @transform_9, window_bounds = array<i64: 1, 96>}, {pipeline_mode = #tpu.pipeline_mode<synchronous>, transform_indices = @transform_10, window_bounds = array<i64: 1, 96>}, {transform_indices = @transform_11, window_bounds = array<i64: 4, 2, 32>}, {transform_indices = @transform_12, window_bounds = array<i64: 4, 2, 32>}, {transform_indices = @transform_13, window_bounds = array<i64: 2, 32>}]} {
    %c0_i32 = arith.constant 0 : i32
    %0 = arith.cmpi eq, %arg1, %c0_i32 : i32
    %1 = arith.extui %0 : i1 to i32
    %c0_i32_0 = arith.constant 0 : i32
    %2 = arith.cmpi ne, %1, %c0_i32_0 : i32
    scf.if %2 {
      %c0_150 = arith.constant 0 : index
      %c0_151 = arith.constant 0 : index
      %362 = vector.load %arg3[%c0_150, %c0_151] : memref<2x32xf32, #tpu.memory_space<vmem>>, vector<2x32xf32>
      %c0_152 = arith.constant 0 : index
      %c0_153 = arith.constant 0 : index
      %363 = vector.load %arg16[%c0_152, %c0_153] : memref<2x32xf32, #tpu.memory_space<vmem>>, vector<2x32xf32>
      tpu.vector_store %arg16[%c0_152, %c0_153], %362 {strides = array<i32>} : memref<2x32xf32, #tpu.memory_space<vmem>>, vector<2x32xf32>,
    } else {
    }
    %c0 = arith.constant 0 : index
    %c0_1 = arith.constant 0 : index
    %3 = vector.load %arg16[%c0, %c0_1] : memref<2x32xf32, #tpu.memory_space<vmem>>, vector<2x32xf32>
    %c0_i32_2 = arith.constant 0 : i32
    %4 = arith.truncf %3 : vector<2x32xf32> to vector<2x32xbf16>
    %c0_3 = arith.constant 0 : index
    %c0_4 = arith.constant 0 : index
    %5 = vector.load %arg8[%c0_3, %c0_4] : memref<32x128xbf16, #tpu.memory_space<vmem>>, vector<32x128xbf16>
    %cst = arith.constant dense<0.000000e+00> : vector<2x128xf32>
    %6 = tpu.matmul %4, %5, %cst {dimension_numbers = #tpu.dot_dimension_numbers<[1], [0], [0], [1], [0, 0, 1, 1], [], []>} : vector<2x32xbf16>, vector<32x128xbf16>, vector<2x128xf32> -> vector<2x128xf32>
    %7 = vector.extract_strided_slice %6 {offsets = [0, 0], sizes = [2, 32], strides = [1, 1]} : vector<2x128xf32> to vector<2x32xf32>
    %8 = vector.shape_cast %7 : vector<2x32xf32> to vector<2x1x32xf32>
    %c0_5 = arith.constant 0 : index
    %c0_6 = arith.constant 0 : index
    %c0_7 = arith.constant 0 : index
    %9 = vector.load %arg5[%c0_5, %c0_6, %c0_7] : memref<2x8x32xf32, #tpu.memory_space<vmem>>, vector<2x8x32xf32>
    %10 = vector.broadcast %8 : vector<2x1x32xf32> to vector<2x8x32xf32>
    %11 = arith.addf %10, %9 : vector<2x8x32xf32>
    %12 = math.tanh %11 : vector<2x8x32xf32>
    %c0_8 = arith.constant 0 : index
    %c0_9 = arith.constant 0 : index
    %13 = vector.load %arg7[%c0_8, %c0_9] : memref<1x32xf32, #tpu.memory_space<vmem>>, vector<1x32xf32>
    %14 = vector.shape_cast %13 : vector<1x32xf32> to vector<1x1x32xf32>
    %15 = vector.broadcast %14 : vector<1x1x32xf32> to vector<2x8x32xf32>
    %16 = arith.mulf %12, %15 : vector<2x8x32xf32>
    %cst_10 = arith.constant dense<0.000000e+00> : vector<2x8xf32>
    %17 = vector.multi_reduction <add>, %16, %cst_10 [2] : vector<2x8x32xf32> to vector<2x8xf32>
    %c0_11 = arith.constant 0 : index
    %c0_12 = arith.constant 0 : index
    %18 = vector.load %arg6[%c0_11, %c0_12] : memref<2x8xf32, #tpu.memory_space<vmem>>, vector<2x8xf32>
    %19 = arith.addf %17, %18 : vector<2x8xf32>
    %cst_13 = arith.constant dense<0xFF800000> : vector<2xf32>
    %20 = vector.multi_reduction <maximumf>, %19, %cst_13 [1] : vector<2x8xf32> to vector<2xf32>
    %21 = vector.shape_cast %20 : vector<2xf32> to vector<2x1xf32>
    %22 = vector.broadcast %21 : vector<2x1xf32> to vector<2x8xf32>
    %23 = arith.subf %19, %22 : vector<2x8xf32>
    %24 = math.exp %23 : vector<2x8xf32>
    %cst_14 = arith.constant dense<0.000000e+00> : vector<2xf32>
    %25 = vector.multi_reduction <add>, %24, %cst_14 [1] : vector<2x8xf32> to vector<2xf32>
    %26 = vector.shape_cast %25 : vector<2xf32> to vector<2x1xf32>
    %27 = tpu.reciprocal %26 {approx = true} : vector<2x1xf32> -> vector<2x1xf32>
    %28 = vector.broadcast %27 : vector<2x1xf32> to vector<2x8xf32>
    %29 = arith.mulf %24, %28 : vector<2x8xf32>
    %30 = vector.shape_cast %29 : vector<2x8xf32> to vector<2x8x1xf32>
    %c0_15 = arith.constant 0 : index
    %c0_16 = arith.constant 0 : index
    %c0_17 = arith.constant 0 : index
    %31 = vector.load %arg4[%c0_15, %c0_16, %c0_17] : memref<2x8x64xbf16, #tpu.memory_space<vmem>>, vector<2x8x64xbf16>
    %32 = arith.extf %31 : vector<2x8x64xbf16> to vector<2x8x64xf32>
    %33 = vector.broadcast %30 : vector<2x8x1xf32> to vector<2x8x64xf32>
    %34 = arith.mulf %33, %32 : vector<2x8x64xf32>
    %cst_18 = arith.constant dense<0.000000e+00> : vector<2x64xf32>
    %35 = vector.multi_reduction <add>, %34, %cst_18 [1] : vector<2x8x64xf32> to vector<2x64xf32>
    %36 = arith.truncf %35 : vector<2x64xf32> to vector<2x64xbf16>
    %c0_19 = arith.constant 0 : index
    %c0_20 = arith.constant 0 : index
    %37 = vector.load %arg9[%c0_19, %c0_20] : memref<64x128xbf16, #tpu.memory_space<vmem>>, vector<64x128xbf16>
    %cst_21 = arith.constant dense<0.000000e+00> : vector<2x128xf32>
    %38 = tpu.matmul %36, %37, %cst_21 {dimension_numbers = #tpu.dot_dimension_numbers<[1], [0], [0], [1], [0, 0, 1, 1], [], []>} : vector<2x64xbf16>, vector<64x128xbf16>, vector<2x128xf32> -> vector<2x128xf32>
    %39 = arith.index_cast %c0_i32_2 : i32 to index
    %c0_22 = arith.constant 0 : index
    %c0_23 = arith.constant 0 : index
    %40 = vector.load %arg2[%39, %c0_22, %c0_23] : memref<4x2x128xf32, #tpu.memory_space<vmem>>, vector<1x2x128xf32>
    %41 = vector.shape_cast %40 : vector<1x2x128xf32> to vector<2x128xf32>
    %42 = vector.extract_strided_slice %41 {offsets = [0, 0], sizes = [2, 96], strides = [1, 1]} : vector<2x128xf32> to vector<2x96xf32>
    %43 = vector.extract_strided_slice %38 {offsets = [0, 0], sizes = [2, 96], strides = [1, 1]} : vector<2x128xf32> to vector<2x96xf32>
    %44 = arith.addf %42, %43 : vector<2x96xf32>
    %c0_24 = arith.constant 0 : index
    %c0_25 = arith.constant 0 : index
    %45 = vector.load %arg11[%c0_24, %c0_25] : memref<1x96xf32, #tpu.memory_space<vmem>>, vector<1x96xf32>
    %46 = vector.broadcast %45 : vector<1x96xf32> to vector<2x96xf32>
    %47 = arith.addf %44, %46 : vector<2x96xf32>
    %48 = vector.extract_strided_slice %6 {offsets = [0, 32], sizes = [2, 96], strides = [1, 1]} : vector<2x128xf32> to vector<2x96xf32>
    %c0_26 = arith.constant 0 : index
    %c0_27 = arith.constant 0 : index
    %49 = vector.load %arg12[%c0_26, %c0_27] : memref<1x96xf32, #tpu.memory_space<vmem>>, vector<1x96xf32>
    %50 = vector.broadcast %49 : vector<1x96xf32> to vector<2x96xf32>
    %51 = arith.addf %48, %50 : vector<2x96xf32>
    %52 = vector.extract_strided_slice %47 {offsets = [0, 0], sizes = [2, 32], strides = [1, 1]} : vector<2x96xf32> to vector<2x32xf32>
    %53 = vector.extract_strided_slice %51 {offsets = [0, 0], sizes = [2, 32], strides = [1, 1]} : vector<2x96xf32> to vector<2x32xf32>
    %54 = arith.addf %52, %53 : vector<2x32xf32>
    %55 = arith.negf %54 : vector<2x32xf32>
    %56 = math.exp %55 : vector<2x32xf32>
    %cst_28 = arith.constant 1.000000e+00 : f32
    %57 = vector.broadcast %cst_28 : f32 to vector<2x32xf32>
    %58 = arith.addf %57, %56 : vector<2x32xf32>
    %59 = arith.divf %57, %58 : vector<2x32xf32>
    %60 = vector.extract_strided_slice %47 {offsets = [0, 32], sizes = [2, 32], strides = [1, 1]} : vector<2x96xf32> to vector<2x32xf32>
    %61 = vector.extract_strided_slice %51 {offsets = [0, 32], sizes = [2, 32], strides = [1, 1]} : vector<2x96xf32> to vector<2x32xf32>
    %62 = arith.addf %60, %61 : vector<2x32xf32>
    %63 = arith.negf %62 : vector<2x32xf32>
    %64 = math.exp %63 : vector<2x32xf32>
    %cst_29 = arith.constant 1.000000e+00 : f32
    %65 = vector.broadcast %cst_29 : f32 to vector<2x32xf32>
    %66 = arith.addf %65, %64 : vector<2x32xf32>
    %67 = arith.divf %65, %66 : vector<2x32xf32>
    %68 = vector.extract_strided_slice %47 {offsets = [0, 64], sizes = [2, 32], strides = [1, 1]} : vector<2x96xf32> to vector<2x32xf32>
    %69 = vector.extract_strided_slice %51 {offsets = [0, 64], sizes = [2, 32], strides = [1, 1]} : vector<2x96xf32> to vector<2x32xf32>
    %70 = arith.mulf %59, %69 : vector<2x32xf32>
    %71 = arith.addf %68, %70 : vector<2x32xf32>
    %72 = math.tanh %71 : vector<2x32xf32>
    %cst_30 = arith.constant 1.000000e+00 : f32
    %73 = vector.broadcast %cst_30 : f32 to vector<2x32xf32>
    %74 = arith.subf %73, %67 : vector<2x32xf32>
    %75 = arith.mulf %74, %72 : vector<2x32xf32>
    %76 = arith.mulf %67, %3 : vector<2x32xf32>
    %77 = arith.addf %75, %76 : vector<2x32xf32>
    %78 = vector.extract_strided_slice %41 {offsets = [0, 96], sizes = [2, 32], strides = [1, 1]} : vector<2x128xf32> to vector<2x32xf32>
    %79 = vector.extract_strided_slice %38 {offsets = [0, 96], sizes = [2, 32], strides = [1, 1]} : vector<2x128xf32> to vector<2x32xf32>
    %80 = arith.addf %78, %79 : vector<2x32xf32>
    %81 = arith.truncf %77 : vector<2x32xf32> to vector<2x32xbf16>
    %c0_31 = arith.constant 0 : index
    %c0_32 = arith.constant 0 : index
    %82 = vector.load %arg10[%c0_31, %c0_32] : memref<32x32xbf16, #tpu.memory_space<vmem>>, vector<32x32xbf16>
    %cst_33 = arith.constant dense<0.000000e+00> : vector<2x32xf32>
    %83 = tpu.matmul %81, %82, %cst_33 {dimension_numbers = #tpu.dot_dimension_numbers<[1], [0], [0], [1], [0, 0, 1, 1], [], []>} : vector<2x32xbf16>, vector<32x32xbf16>, vector<2x32xf32> -> vector<2x32xf32>
    %84 = arith.addf %80, %83 : vector<2x32xf32>
    %85 = arith.index_cast %c0_i32_2 : i32 to index
    %c0_34 = arith.constant 0 : index
    %c0_35 = arith.constant 0 : index
    %86 = vector.load %arg13[%85, %c0_34, %c0_35] : memref<4x2x32xf32, #tpu.memory_space<vmem>>, vector<1x2x32xf32>
    %87 = vector.shape_cast %86 : vector<1x2x32xf32> to vector<2x32xf32>
    %88 = vector.shape_cast %77 : vector<2x32xf32> to vector<1x2x32xf32>
    tpu.vector_store %arg13[%85, %c0_34, %c0_35], %88 {strides = array<i32>} : memref<4x2x32xf32, #tpu.memory_space<vmem>>, vector<1x2x32xf32>,
    %89 = arith.index_cast %c0_i32_2 : i32 to index
    %c0_36 = arith.constant 0 : index
    %c0_37 = arith.constant 0 : index
    %90 = vector.load %arg14[%89, %c0_36, %c0_37] : memref<4x2x32xf32, #tpu.memory_space<vmem>>, vector<1x2x32xf32>
    %91 = vector.shape_cast %90 : vector<1x2x32xf32> to vector<2x32xf32>
    %92 = vector.shape_cast %84 : vector<2x32xf32> to vector<1x2x32xf32>
    tpu.vector_store %arg14[%89, %c0_36, %c0_37], %92 {strides = array<i32>} : memref<4x2x32xf32, #tpu.memory_space<vmem>>, vector<1x2x32xf32>,
    %c1_i32 = arith.constant 1 : i32
    %93 = arith.truncf %77 : vector<2x32xf32> to vector<2x32xbf16>
    %c0_38 = arith.constant 0 : index
    %c0_39 = arith.constant 0 : index
    %94 = vector.load %arg8[%c0_38, %c0_39] : memref<32x128xbf16, #tpu.memory_space<vmem>>, vector<32x128xbf16>
    %cst_40 = arith.constant dense<0.000000e+00> : vector<2x128xf32>
    %95 = tpu.matmul %93, %94, %cst_40 {dimension_numbers = #tpu.dot_dimension_numbers<[1], [0], [0], [1], [0, 0, 1, 1], [], []>} : vector<2x32xbf16>, vector<32x128xbf16>, vector<2x128xf32> -> vector<2x128xf32>
    %96 = vector.extract_strided_slice %95 {offsets = [0, 0], sizes = [2, 32], strides = [1, 1]} : vector<2x128xf32> to vector<2x32xf32>
    %97 = vector.shape_cast %96 : vector<2x32xf32> to vector<2x1x32xf32>
    %c0_41 = arith.constant 0 : index
    %c0_42 = arith.constant 0 : index
    %c0_43 = arith.constant 0 : index
    %98 = vector.load %arg5[%c0_41, %c0_42, %c0_43] : memref<2x8x32xf32, #tpu.memory_space<vmem>>, vector<2x8x32xf32>
    %99 = vector.broadcast %97 : vector<2x1x32xf32> to vector<2x8x32xf32>
    %100 = arith.addf %99, %98 : vector<2x8x32xf32>
    %101 = math.tanh %100 : vector<2x8x32xf32>
    %c0_44 = arith.constant 0 : index
    %c0_45 = arith.constant 0 : index
    %102 = vector.load %arg7[%c0_44, %c0_45] : memref<1x32xf32, #tpu.memory_space<vmem>>, vector<1x32xf32>
    %103 = vector.shape_cast %102 : vector<1x32xf32> to vector<1x1x32xf32>
    %104 = vector.broadcast %103 : vector<1x1x32xf32> to vector<2x8x32xf32>
    %105 = arith.mulf %101, %104 : vector<2x8x32xf32>
    %cst_46 = arith.constant dense<0.000000e+00> : vector<2x8xf32>
    %106 = vector.multi_reduction <add>, %105, %cst_46 [2] : vector<2x8x32xf32> to vector<2x8xf32>
    %c0_47 = arith.constant 0 : index
    %c0_48 = arith.constant 0 : index
    %107 = vector.load %arg6[%c0_47, %c0_48] : memref<2x8xf32, #tpu.memory_space<vmem>>, vector<2x8xf32>
    %108 = arith.addf %106, %107 : vector<2x8xf32>
    %cst_49 = arith.constant dense<0xFF800000> : vector<2xf32>
    %109 = vector.multi_reduction <maximumf>, %108, %cst_49 [1] : vector<2x8xf32> to vector<2xf32>
    %110 = vector.shape_cast %109 : vector<2xf32> to vector<2x1xf32>
    %111 = vector.broadcast %110 : vector<2x1xf32> to vector<2x8xf32>
    %112 = arith.subf %108, %111 : vector<2x8xf32>
    %113 = math.exp %112 : vector<2x8xf32>
    %cst_50 = arith.constant dense<0.000000e+00> : vector<2xf32>
    %114 = vector.multi_reduction <add>, %113, %cst_50 [1] : vector<2x8xf32> to vector<2xf32>
    %115 = vector.shape_cast %114 : vector<2xf32> to vector<2x1xf32>
    %116 = tpu.reciprocal %115 {approx = true} : vector<2x1xf32> -> vector<2x1xf32>
    %117 = vector.broadcast %116 : vector<2x1xf32> to vector<2x8xf32>
    %118 = arith.mulf %113, %117 : vector<2x8xf32>
    %119 = vector.shape_cast %118 : vector<2x8xf32> to vector<2x8x1xf32>
    %c0_51 = arith.constant 0 : index
    %c0_52 = arith.constant 0 : index
    %c0_53 = arith.constant 0 : index
    %120 = vector.load %arg4[%c0_51, %c0_52, %c0_53] : memref<2x8x64xbf16, #tpu.memory_space<vmem>>, vector<2x8x64xbf16>
    %121 = arith.extf %120 : vector<2x8x64xbf16> to vector<2x8x64xf32>
    %122 = vector.broadcast %119 : vector<2x8x1xf32> to vector<2x8x64xf32>
    %123 = arith.mulf %122, %121 : vector<2x8x64xf32>
    %cst_54 = arith.constant dense<0.000000e+00> : vector<2x64xf32>
    %124 = vector.multi_reduction <add>, %123, %cst_54 [1] : vector<2x8x64xf32> to vector<2x64xf32>
    %125 = arith.truncf %124 : vector<2x64xf32> to vector<2x64xbf16>
    %c0_55 = arith.constant 0 : index
    %c0_56 = arith.constant 0 : index
    %126 = vector.load %arg9[%c0_55, %c0_56] : memref<64x128xbf16, #tpu.memory_space<vmem>>, vector<64x128xbf16>
    %cst_57 = arith.constant dense<0.000000e+00> : vector<2x128xf32>
    %127 = tpu.matmul %125, %126, %cst_57 {dimension_numbers = #tpu.dot_dimension_numbers<[1], [0], [0], [1], [0, 0, 1, 1], [], []>} : vector<2x64xbf16>, vector<64x128xbf16>, vector<2x128xf32> -> vector<2x128xf32>
    %128 = arith.index_cast %c1_i32 : i32 to index
    %c0_58 = arith.constant 0 : index
    %c0_59 = arith.constant 0 : index
    %129 = vector.load %arg2[%128, %c0_58, %c0_59] : memref<4x2x128xf32, #tpu.memory_space<vmem>>, vector<1x2x128xf32>
    %130 = vector.shape_cast %129 : vector<1x2x128xf32> to vector<2x128xf32>
    %131 = vector.extract_strided_slice %130 {offsets = [0, 0], sizes = [2, 96], strides = [1, 1]} : vector<2x128xf32> to vector<2x96xf32>
    %132 = vector.extract_strided_slice %127 {offsets = [0, 0], sizes = [2, 96], strides = [1, 1]} : vector<2x128xf32> to vector<2x96xf32>
    %133 = arith.addf %131, %132 : vector<2x96xf32>
    %c0_60 = arith.constant 0 : index
    %c0_61 = arith.constant 0 : index
    %134 = vector.load %arg11[%c0_60, %c0_61] : memref<1x96xf32, #tpu.memory_space<vmem>>, vector<1x96xf32>
    %135 = vector.broadcast %134 : vector<1x96xf32> to vector<2x96xf32>
    %136 = arith.addf %133, %135 : vector<2x96xf32>
    %137 = vector.extract_strided_slice %95 {offsets = [0, 32], sizes = [2, 96], strides = [1, 1]} : vector<2x128xf32> to vector<2x96xf32>
    %c0_62 = arith.constant 0 : index
    %c0_63 = arith.constant 0 : index
    %138 = vector.load %arg12[%c0_62, %c0_63] : memref<1x96xf32, #tpu.memory_space<vmem>>, vector<1x96xf32>
    %139 = vector.broadcast %138 : vector<1x96xf32> to vector<2x96xf32>
    %140 = arith.addf %137, %139 : vector<2x96xf32>
    %141 = vector.extract_strided_slice %136 {offsets = [0, 0], sizes = [2, 32], strides = [1, 1]} : vector<2x96xf32> to vector<2x32xf32>
    %142 = vector.extract_strided_slice %140 {offsets = [0, 0], sizes = [2, 32], strides = [1, 1]} : vector<2x96xf32> to vector<2x32xf32>
    %143 = arith.addf %141, %142 : vector<2x32xf32>
    %144 = arith.negf %143 : vector<2x32xf32>
    %145 = math.exp %144 : vector<2x32xf32>
    %cst_64 = arith.constant 1.000000e+00 : f32
    %146 = vector.broadcast %cst_64 : f32 to vector<2x32xf32>
    %147 = arith.addf %146, %145 : vector<2x32xf32>
    %148 = arith.divf %146, %147 : vector<2x32xf32>
    %149 = vector.extract_strided_slice %136 {offsets = [0, 32], sizes = [2, 32], strides = [1, 1]} : vector<2x96xf32> to vector<2x32xf32>
    %150 = vector.extract_strided_slice %140 {offsets = [0, 32], sizes = [2, 32], strides = [1, 1]} : vector<2x96xf32> to vector<2x32xf32>
    %151 = arith.addf %149, %150 : vector<2x32xf32>
    %152 = arith.negf %151 : vector<2x32xf32>
    %153 = math.exp %152 : vector<2x32xf32>
    %cst_65 = arith.constant 1.000000e+00 : f32
    %154 = vector.broadcast %cst_65 : f32 to vector<2x32xf32>
    %155 = arith.addf %154, %153 : vector<2x32xf32>
    %156 = arith.divf %154, %155 : vector<2x32xf32>
    %157 = vector.extract_strided_slice %136 {offsets = [0, 64], sizes = [2, 32], strides = [1, 1]} : vector<2x96xf32> to vector<2x32xf32>
    %158 = vector.extract_strided_slice %140 {offsets = [0, 64], sizes = [2, 32], strides = [1, 1]} : vector<2x96xf32> to vector<2x32xf32>
    %159 = arith.mulf %148, %158 : vector<2x32xf32>
    %160 = arith.addf %157, %159 : vector<2x32xf32>
    %161 = math.tanh %160 : vector<2x32xf32>
    %cst_66 = arith.constant 1.000000e+00 : f32
    %162 = vector.broadcast %cst_66 : f32 to vector<2x32xf32>
    %163 = arith.subf %162, %156 : vector<2x32xf32>
    %164 = arith.mulf %163, %161 : vector<2x32xf32>
    %165 = arith.mulf %156, %77 : vector<2x32xf32>
    %166 = arith.addf %164, %165 : vector<2x32xf32>
    %167 = vector.extract_strided_slice %130 {offsets = [0, 96], sizes = [2, 32], strides = [1, 1]} : vector<2x128xf32> to vector<2x32xf32>
    %168 = vector.extract_strided_slice %127 {offsets = [0, 96], sizes = [2, 32], strides = [1, 1]} : vector<2x128xf32> to vector<2x32xf32>
    %169 = arith.addf %167, %168 : vector<2x32xf32>
    %170 = arith.truncf %166 : vector<2x32xf32> to vector<2x32xbf16>
    %c0_67 = arith.constant 0 : index
    %c0_68 = arith.constant 0 : index
    %171 = vector.load %arg10[%c0_67, %c0_68] : memref<32x32xbf16, #tpu.memory_space<vmem>>, vector<32x32xbf16>
    %cst_69 = arith.constant dense<0.000000e+00> : vector<2x32xf32>
    %172 = tpu.matmul %170, %171, %cst_69 {dimension_numbers = #tpu.dot_dimension_numbers<[1], [0], [0], [1], [0, 0, 1, 1], [], []>} : vector<2x32xbf16>, vector<32x32xbf16>, vector<2x32xf32> -> vector<2x32xf32>
    %173 = arith.addf %169, %172 : vector<2x32xf32>
    %174 = arith.index_cast %c1_i32 : i32 to index
    %c0_70 = arith.constant 0 : index
    %c0_71 = arith.constant 0 : index
    %175 = vector.load %arg13[%174, %c0_70, %c0_71] : memref<4x2x32xf32, #tpu.memory_space<vmem>>, vector<1x2x32xf32>
    %176 = vector.shape_cast %175 : vector<1x2x32xf32> to vector<2x32xf32>
    %177 = vector.shape_cast %166 : vector<2x32xf32> to vector<1x2x32xf32>
    tpu.vector_store %arg13[%174, %c0_70, %c0_71], %177 {strides = array<i32>} : memref<4x2x32xf32, #tpu.memory_space<vmem>>, vector<1x2x32xf32>,
    %178 = arith.index_cast %c1_i32 : i32 to index
    %c0_72 = arith.constant 0 : index
    %c0_73 = arith.constant 0 : index
    %179 = vector.load %arg14[%178, %c0_72, %c0_73] : memref<4x2x32xf32, #tpu.memory_space<vmem>>, vector<1x2x32xf32>
    %180 = vector.shape_cast %179 : vector<1x2x32xf32> to vector<2x32xf32>
    %181 = vector.shape_cast %173 : vector<2x32xf32> to vector<1x2x32xf32>
    tpu.vector_store %arg14[%178, %c0_72, %c0_73], %181 {strides = array<i32>} : memref<4x2x32xf32, #tpu.memory_space<vmem>>, vector<1x2x32xf32>,
    %c2_i32 = arith.constant 2 : i32
    %182 = arith.truncf %166 : vector<2x32xf32> to vector<2x32xbf16>
    %c0_74 = arith.constant 0 : index
    %c0_75 = arith.constant 0 : index
    %183 = vector.load %arg8[%c0_74, %c0_75] : memref<32x128xbf16, #tpu.memory_space<vmem>>, vector<32x128xbf16>
    %cst_76 = arith.constant dense<0.000000e+00> : vector<2x128xf32>
    %184 = tpu.matmul %182, %183, %cst_76 {dimension_numbers = #tpu.dot_dimension_numbers<[1], [0], [0], [1], [0, 0, 1, 1], [], []>} : vector<2x32xbf16>, vector<32x128xbf16>, vector<2x128xf32> -> vector<2x128xf32>
    %185 = vector.extract_strided_slice %184 {offsets = [0, 0], sizes = [2, 32], strides = [1, 1]} : vector<2x128xf32> to vector<2x32xf32>
    %186 = vector.shape_cast %185 : vector<2x32xf32> to vector<2x1x32xf32>
    %c0_77 = arith.constant 0 : index
    %c0_78 = arith.constant 0 : index
    %c0_79 = arith.constant 0 : index
    %187 = vector.load %arg5[%c0_77, %c0_78, %c0_79] : memref<2x8x32xf32, #tpu.memory_space<vmem>>, vector<2x8x32xf32>
    %188 = vector.broadcast %186 : vector<2x1x32xf32> to vector<2x8x32xf32>
    %189 = arith.addf %188, %187 : vector<2x8x32xf32>
    %190 = math.tanh %189 : vector<2x8x32xf32>
    %c0_80 = arith.constant 0 : index
    %c0_81 = arith.constant 0 : index
    %191 = vector.load %arg7[%c0_80, %c0_81] : memref<1x32xf32, #tpu.memory_space<vmem>>, vector<1x32xf32>
    %192 = vector.shape_cast %191 : vector<1x32xf32> to vector<1x1x32xf32>
    %193 = vector.broadcast %192 : vector<1x1x32xf32> to vector<2x8x32xf32>
    %194 = arith.mulf %190, %193 : vector<2x8x32xf32>
    %cst_82 = arith.constant dense<0.000000e+00> : vector<2x8xf32>
    %195 = vector.multi_reduction <add>, %194, %cst_82 [2] : vector<2x8x32xf32> to vector<2x8xf32>
    %c0_83 = arith.constant 0 : index
    %c0_84 = arith.constant 0 : index
    %196 = vector.load %arg6[%c0_83, %c0_84] : memref<2x8xf32, #tpu.memory_space<vmem>>, vector<2x8xf32>
    %197 = arith.addf %195, %196 : vector<2x8xf32>
    %cst_85 = arith.constant dense<0xFF800000> : vector<2xf32>
    %198 = vector.multi_reduction <maximumf>, %197, %cst_85 [1] : vector<2x8xf32> to vector<2xf32>
    %199 = vector.shape_cast %198 : vector<2xf32> to vector<2x1xf32>
    %200 = vector.broadcast %199 : vector<2x1xf32> to vector<2x8xf32>
    %201 = arith.subf %197, %200 : vector<2x8xf32>
    %202 = math.exp %201 : vector<2x8xf32>
    %cst_86 = arith.constant dense<0.000000e+00> : vector<2xf32>
    %203 = vector.multi_reduction <add>, %202, %cst_86 [1] : vector<2x8xf32> to vector<2xf32>
    %204 = vector.shape_cast %203 : vector<2xf32> to vector<2x1xf32>
    %205 = tpu.reciprocal %204 {approx = true} : vector<2x1xf32> -> vector<2x1xf32>
    %206 = vector.broadcast %205 : vector<2x1xf32> to vector<2x8xf32>
    %207 = arith.mulf %202, %206 : vector<2x8xf32>
    %208 = vector.shape_cast %207 : vector<2x8xf32> to vector<2x8x1xf32>
    %c0_87 = arith.constant 0 : index
    %c0_88 = arith.constant 0 : index
    %c0_89 = arith.constant 0 : index
    %209 = vector.load %arg4[%c0_87, %c0_88, %c0_89] : memref<2x8x64xbf16, #tpu.memory_space<vmem>>, vector<2x8x64xbf16>
    %210 = arith.extf %209 : vector<2x8x64xbf16> to vector<2x8x64xf32>
    %211 = vector.broadcast %208 : vector<2x8x1xf32> to vector<2x8x64xf32>
    %212 = arith.mulf %211, %210 : vector<2x8x64xf32>
    %cst_90 = arith.constant dense<0.000000e+00> : vector<2x64xf32>
    %213 = vector.multi_reduction <add>, %212, %cst_90 [1] : vector<2x8x64xf32> to vector<2x64xf32>
    %214 = arith.truncf %213 : vector<2x64xf32> to vector<2x64xbf16>
    %c0_91 = arith.constant 0 : index
    %c0_92 = arith.constant 0 : index
    %215 = vector.load %arg9[%c0_91, %c0_92] : memref<64x128xbf16, #tpu.memory_space<vmem>>, vector<64x128xbf16>
    %cst_93 = arith.constant dense<0.000000e+00> : vector<2x128xf32>
    %216 = tpu.matmul %214, %215, %cst_93 {dimension_numbers = #tpu.dot_dimension_numbers<[1], [0], [0], [1], [0, 0, 1, 1], [], []>} : vector<2x64xbf16>, vector<64x128xbf16>, vector<2x128xf32> -> vector<2x128xf32>
    %217 = arith.index_cast %c2_i32 : i32 to index
    %c0_94 = arith.constant 0 : index
    %c0_95 = arith.constant 0 : index
    %218 = vector.load %arg2[%217, %c0_94, %c0_95] : memref<4x2x128xf32, #tpu.memory_space<vmem>>, vector<1x2x128xf32>
    %219 = vector.shape_cast %218 : vector<1x2x128xf32> to vector<2x128xf32>
    %220 = vector.extract_strided_slice %219 {offsets = [0, 0], sizes = [2, 96], strides = [1, 1]} : vector<2x128xf32> to vector<2x96xf32>
    %221 = vector.extract_strided_slice %216 {offsets = [0, 0], sizes = [2, 96], strides = [1, 1]} : vector<2x128xf32> to vector<2x96xf32>
    %222 = arith.addf %220, %221 : vector<2x96xf32>
    %c0_96 = arith.constant 0 : index
    %c0_97 = arith.constant 0 : index
    %223 = vector.load %arg11[%c0_96, %c0_97] : memref<1x96xf32, #tpu.memory_space<vmem>>, vector<1x96xf32>
    %224 = vector.broadcast %223 : vector<1x96xf32> to vector<2x96xf32>
    %225 = arith.addf %222, %224 : vector<2x96xf32>
    %226 = vector.extract_strided_slice %184 {offsets = [0, 32], sizes = [2, 96], strides = [1, 1]} : vector<2x128xf32> to vector<2x96xf32>
    %c0_98 = arith.constant 0 : index
    %c0_99 = arith.constant 0 : index
    %227 = vector.load %arg12[%c0_98, %c0_99] : memref<1x96xf32, #tpu.memory_space<vmem>>, vector<1x96xf32>
    %228 = vector.broadcast %227 : vector<1x96xf32> to vector<2x96xf32>
    %229 = arith.addf %226, %228 : vector<2x96xf32>
    %230 = vector.extract_strided_slice %225 {offsets = [0, 0], sizes = [2, 32], strides = [1, 1]} : vector<2x96xf32> to vector<2x32xf32>
    %231 = vector.extract_strided_slice %229 {offsets = [0, 0], sizes = [2, 32], strides = [1, 1]} : vector<2x96xf32> to vector<2x32xf32>
    %232 = arith.addf %230, %231 : vector<2x32xf32>
    %233 = arith.negf %232 : vector<2x32xf32>
    %234 = math.exp %233 : vector<2x32xf32>
    %cst_100 = arith.constant 1.000000e+00 : f32
    %235 = vector.broadcast %cst_100 : f32 to vector<2x32xf32>
    %236 = arith.addf %235, %234 : vector<2x32xf32>
    %237 = arith.divf %235, %236 : vector<2x32xf32>
    %238 = vector.extract_strided_slice %225 {offsets = [0, 32], sizes = [2, 32], strides = [1, 1]} : vector<2x96xf32> to vector<2x32xf32>
    %239 = vector.extract_strided_slice %229 {offsets = [0, 32], sizes = [2, 32], strides = [1, 1]} : vector<2x96xf32> to vector<2x32xf32>
    %240 = arith.addf %238, %239 : vector<2x32xf32>
    %241 = arith.negf %240 : vector<2x32xf32>
    %242 = math.exp %241 : vector<2x32xf32>
    %cst_101 = arith.constant 1.000000e+00 : f32
    %243 = vector.broadcast %cst_101 : f32 to vector<2x32xf32>
    %244 = arith.addf %243, %242 : vector<2x32xf32>
    %245 = arith.divf %243, %244 : vector<2x32xf32>
    %246 = vector.extract_strided_slice %225 {offsets = [0, 64], sizes = [2, 32], strides = [1, 1]} : vector<2x96xf32> to vector<2x32xf32>
    %247 = vector.extract_strided_slice %229 {offsets = [0, 64], sizes = [2, 32], strides = [1, 1]} : vector<2x96xf32> to vector<2x32xf32>
    %248 = arith.mulf %237, %247 : vector<2x32xf32>
    %249 = arith.addf %246, %248 : vector<2x32xf32>
    %250 = math.tanh %249 : vector<2x32xf32>
    %cst_102 = arith.constant 1.000000e+00 : f32
    %251 = vector.broadcast %cst_102 : f32 to vector<2x32xf32>
    %252 = arith.subf %251, %245 : vector<2x32xf32>
    %253 = arith.mulf %252, %250 : vector<2x32xf32>
    %254 = arith.mulf %245, %166 : vector<2x32xf32>
    %255 = arith.addf %253, %254 : vector<2x32xf32>
    %256 = vector.extract_strided_slice %219 {offsets = [0, 96], sizes = [2, 32], strides = [1, 1]} : vector<2x128xf32> to vector<2x32xf32>
    %257 = vector.extract_strided_slice %216 {offsets = [0, 96], sizes = [2, 32], strides = [1, 1]} : vector<2x128xf32> to vector<2x32xf32>
    %258 = arith.addf %256, %257 : vector<2x32xf32>
    %259 = arith.truncf %255 : vector<2x32xf32> to vector<2x32xbf16>
    %c0_103 = arith.constant 0 : index
    %c0_104 = arith.constant 0 : index
    %260 = vector.load %arg10[%c0_103, %c0_104] : memref<32x32xbf16, #tpu.memory_space<vmem>>, vector<32x32xbf16>
    %cst_105 = arith.constant dense<0.000000e+00> : vector<2x32xf32>
    %261 = tpu.matmul %259, %260, %cst_105 {dimension_numbers = #tpu.dot_dimension_numbers<[1], [0], [0], [1], [0, 0, 1, 1], [], []>} : vector<2x32xbf16>, vector<32x32xbf16>, vector<2x32xf32> -> vector<2x32xf32>
    %262 = arith.addf %258, %261 : vector<2x32xf32>
    %263 = arith.index_cast %c2_i32 : i32 to index
    %c0_106 = arith.constant 0 : index
    %c0_107 = arith.constant 0 : index
    %264 = vector.load %arg13[%263, %c0_106, %c0_107] : memref<4x2x32xf32, #tpu.memory_space<vmem>>, vector<1x2x32xf32>
    %265 = vector.shape_cast %264 : vector<1x2x32xf32> to vector<2x32xf32>
    %266 = vector.shape_cast %255 : vector<2x32xf32> to vector<1x2x32xf32>
    tpu.vector_store %arg13[%263, %c0_106, %c0_107], %266 {strides = array<i32>} : memref<4x2x32xf32, #tpu.memory_space<vmem>>, vector<1x2x32xf32>,
    %267 = arith.index_cast %c2_i32 : i32 to index
    %c0_108 = arith.constant 0 : index
    %c0_109 = arith.constant 0 : index
    %268 = vector.load %arg14[%267, %c0_108, %c0_109] : memref<4x2x32xf32, #tpu.memory_space<vmem>>, vector<1x2x32xf32>
    %269 = vector.shape_cast %268 : vector<1x2x32xf32> to vector<2x32xf32>
    %270 = vector.shape_cast %262 : vector<2x32xf32> to vector<1x2x32xf32>
    tpu.vector_store %arg14[%267, %c0_108, %c0_109], %270 {strides = array<i32>} : memref<4x2x32xf32, #tpu.memory_space<vmem>>, vector<1x2x32xf32>,
    %c3_i32 = arith.constant 3 : i32
    %271 = arith.truncf %255 : vector<2x32xf32> to vector<2x32xbf16>
    %c0_110 = arith.constant 0 : index
    %c0_111 = arith.constant 0 : index
    %272 = vector.load %arg8[%c0_110, %c0_111] : memref<32x128xbf16, #tpu.memory_space<vmem>>, vector<32x128xbf16>
    %cst_112 = arith.constant dense<0.000000e+00> : vector<2x128xf32>
    %273 = tpu.matmul %271, %272, %cst_112 {dimension_numbers = #tpu.dot_dimension_numbers<[1], [0], [0], [1], [0, 0, 1, 1], [], []>} : vector<2x32xbf16>, vector<32x128xbf16>, vector<2x128xf32> -> vector<2x128xf32>
    %274 = vector.extract_strided_slice %273 {offsets = [0, 0], sizes = [2, 32], strides = [1, 1]} : vector<2x128xf32> to vector<2x32xf32>
    %275 = vector.shape_cast %274 : vector<2x32xf32> to vector<2x1x32xf32>
    %c0_113 = arith.constant 0 : index
    %c0_114 = arith.constant 0 : index
    %c0_115 = arith.constant 0 : index
    %276 = vector.load %arg5[%c0_113, %c0_114, %c0_115] : memref<2x8x32xf32, #tpu.memory_space<vmem>>, vector<2x8x32xf32>
    %277 = vector.broadcast %275 : vector<2x1x32xf32> to vector<2x8x32xf32>
    %278 = arith.addf %277, %276 : vector<2x8x32xf32>
    %279 = math.tanh %278 : vector<2x8x32xf32>
    %c0_116 = arith.constant 0 : index
    %c0_117 = arith.constant 0 : index
    %280 = vector.load %arg7[%c0_116, %c0_117] : memref<1x32xf32, #tpu.memory_space<vmem>>, vector<1x32xf32>
    %281 = vector.shape_cast %280 : vector<1x32xf32> to vector<1x1x32xf32>
    %282 = vector.broadcast %281 : vector<1x1x32xf32> to vector<2x8x32xf32>
    %283 = arith.mulf %279, %282 : vector<2x8x32xf32>
    %cst_118 = arith.constant dense<0.000000e+00> : vector<2x8xf32>
    %284 = vector.multi_reduction <add>, %283, %cst_118 [2] : vector<2x8x32xf32> to vector<2x8xf32>
    %c0_119 = arith.constant 0 : index
    %c0_120 = arith.constant 0 : index
    %285 = vector.load %arg6[%c0_119, %c0_120] : memref<2x8xf32, #tpu.memory_space<vmem>>, vector<2x8xf32>
    %286 = arith.addf %284, %285 : vector<2x8xf32>
    %cst_121 = arith.constant dense<0xFF800000> : vector<2xf32>
    %287 = vector.multi_reduction <maximumf>, %286, %cst_121 [1] : vector<2x8xf32> to vector<2xf32>
    %288 = vector.shape_cast %287 : vector<2xf32> to vector<2x1xf32>
    %289 = vector.broadcast %288 : vector<2x1xf32> to vector<2x8xf32>
    %290 = arith.subf %286, %289 : vector<2x8xf32>
    %291 = math.exp %290 : vector<2x8xf32>
    %cst_122 = arith.constant dense<0.000000e+00> : vector<2xf32>
    %292 = vector.multi_reduction <add>, %291, %cst_122 [1] : vector<2x8xf32> to vector<2xf32>
    %293 = vector.shape_cast %292 : vector<2xf32> to vector<2x1xf32>
    %294 = tpu.reciprocal %293 {approx = true} : vector<2x1xf32> -> vector<2x1xf32>
    %295 = vector.broadcast %294 : vector<2x1xf32> to vector<2x8xf32>
    %296 = arith.mulf %291, %295 : vector<2x8xf32>
    %297 = vector.shape_cast %296 : vector<2x8xf32> to vector<2x8x1xf32>
    %c0_123 = arith.constant 0 : index
    %c0_124 = arith.constant 0 : index
    %c0_125 = arith.constant 0 : index
    %298 = vector.load %arg4[%c0_123, %c0_124, %c0_125] : memref<2x8x64xbf16, #tpu.memory_space<vmem>>, vector<2x8x64xbf16>
    %299 = arith.extf %298 : vector<2x8x64xbf16> to vector<2x8x64xf32>
    %300 = vector.broadcast %297 : vector<2x8x1xf32> to vector<2x8x64xf32>
    %301 = arith.mulf %300, %299 : vector<2x8x64xf32>
    %cst_126 = arith.constant dense<0.000000e+00> : vector<2x64xf32>
    %302 = vector.multi_reduction <add>, %301, %cst_126 [1] : vector<2x8x64xf32> to vector<2x64xf32>
    %303 = arith.truncf %302 : vector<2x64xf32> to vector<2x64xbf16>
    %c0_127 = arith.constant 0 : index
    %c0_128 = arith.constant 0 : index
    %304 = vector.load %arg9[%c0_127, %c0_128] : memref<64x128xbf16, #tpu.memory_space<vmem>>, vector<64x128xbf16>
    %cst_129 = arith.constant dense<0.000000e+00> : vector<2x128xf32>
    %305 = tpu.matmul %303, %304, %cst_129 {dimension_numbers = #tpu.dot_dimension_numbers<[1], [0], [0], [1], [0, 0, 1, 1], [], []>} : vector<2x64xbf16>, vector<64x128xbf16>, vector<2x128xf32> -> vector<2x128xf32>
    %306 = arith.index_cast %c3_i32 : i32 to index
    %c0_130 = arith.constant 0 : index
    %c0_131 = arith.constant 0 : index
    %307 = vector.load %arg2[%306, %c0_130, %c0_131] : memref<4x2x128xf32, #tpu.memory_space<vmem>>, vector<1x2x128xf32>
    %308 = vector.shape_cast %307 : vector<1x2x128xf32> to vector<2x128xf32>
    %309 = vector.extract_strided_slice %308 {offsets = [0, 0], sizes = [2, 96], strides = [1, 1]} : vector<2x128xf32> to vector<2x96xf32>
    %310 = vector.extract_strided_slice %305 {offsets = [0, 0], sizes = [2, 96], strides = [1, 1]} : vector<2x128xf32> to vector<2x96xf32>
    %311 = arith.addf %309, %310 : vector<2x96xf32>
    %c0_132 = arith.constant 0 : index
    %c0_133 = arith.constant 0 : index
    %312 = vector.load %arg11[%c0_132, %c0_133] : memref<1x96xf32, #tpu.memory_space<vmem>>, vector<1x96xf32>
    %313 = vector.broadcast %312 : vector<1x96xf32> to vector<2x96xf32>
    %314 = arith.addf %311, %313 : vector<2x96xf32>
    %315 = vector.extract_strided_slice %273 {offsets = [0, 32], sizes = [2, 96], strides = [1, 1]} : vector<2x128xf32> to vector<2x96xf32>
    %c0_134 = arith.constant 0 : index
    %c0_135 = arith.constant 0 : index
    %316 = vector.load %arg12[%c0_134, %c0_135] : memref<1x96xf32, #tpu.memory_space<vmem>>, vector<1x96xf32>
    %317 = vector.broadcast %316 : vector<1x96xf32> to vector<2x96xf32>
    %318 = arith.addf %315, %317 : vector<2x96xf32>
    %319 = vector.extract_strided_slice %314 {offsets = [0, 0], sizes = [2, 32], strides = [1, 1]} : vector<2x96xf32> to vector<2x32xf32>
    %320 = vector.extract_strided_slice %318 {offsets = [0, 0], sizes = [2, 32], strides = [1, 1]} : vector<2x96xf32> to vector<2x32xf32>
    %321 = arith.addf %319, %320 : vector<2x32xf32>
    %322 = arith.negf %321 : vector<2x32xf32>
    %323 = math.exp %322 : vector<2x32xf32>
    %cst_136 = arith.constant 1.000000e+00 : f32
    %324 = vector.broadcast %cst_136 : f32 to vector<2x32xf32>
    %325 = arith.addf %324, %323 : vector<2x32xf32>
    %326 = arith.divf %324, %325 : vector<2x32xf32>
    %327 = vector.extract_strided_slice %314 {offsets = [0, 32], sizes = [2, 32], strides = [1, 1]} : vector<2x96xf32> to vector<2x32xf32>
    %328 = vector.extract_strided_slice %318 {offsets = [0, 32], sizes = [2, 32], strides = [1, 1]} : vector<2x96xf32> to vector<2x32xf32>
    %329 = arith.addf %327, %328 : vector<2x32xf32>
    %330 = arith.negf %329 : vector<2x32xf32>
    %331 = math.exp %330 : vector<2x32xf32>
    %cst_137 = arith.constant 1.000000e+00 : f32
    %332 = vector.broadcast %cst_137 : f32 to vector<2x32xf32>
    %333 = arith.addf %332, %331 : vector<2x32xf32>
    %334 = arith.divf %332, %333 : vector<2x32xf32>
    %335 = vector.extract_strided_slice %314 {offsets = [0, 64], sizes = [2, 32], strides = [1, 1]} : vector<2x96xf32> to vector<2x32xf32>
    %336 = vector.extract_strided_slice %318 {offsets = [0, 64], sizes = [2, 32], strides = [1, 1]} : vector<2x96xf32> to vector<2x32xf32>
    %337 = arith.mulf %326, %336 : vector<2x32xf32>
    %338 = arith.addf %335, %337 : vector<2x32xf32>
    %339 = math.tanh %338 : vector<2x32xf32>
    %cst_138 = arith.constant 1.000000e+00 : f32
    %340 = vector.broadcast %cst_138 : f32 to vector<2x32xf32>
    %341 = arith.subf %340, %334 : vector<2x32xf32>
    %342 = arith.mulf %341, %339 : vector<2x32xf32>
    %343 = arith.mulf %334, %255 : vector<2x32xf32>
    %344 = arith.addf %342, %343 : vector<2x32xf32>
    %345 = vector.extract_strided_slice %308 {offsets = [0, 96], sizes = [2, 32], strides = [1, 1]} : vector<2x128xf32> to vector<2x32xf32>
    %346 = vector.extract_strided_slice %305 {offsets = [0, 96], sizes = [2, 32], strides = [1, 1]} : vector<2x128xf32> to vector<2x32xf32>
    %347 = arith.addf %345, %346 : vector<2x32xf32>
    %348 = arith.truncf %344 : vector<2x32xf32> to vector<2x32xbf16>
    %c0_139 = arith.constant 0 : index
    %c0_140 = arith.constant 0 : index
    %349 = vector.load %arg10[%c0_139, %c0_140] : memref<32x32xbf16, #tpu.memory_space<vmem>>, vector<32x32xbf16>
    %cst_141 = arith.constant dense<0.000000e+00> : vector<2x32xf32>
    %350 = tpu.matmul %348, %349, %cst_141 {dimension_numbers = #tpu.dot_dimension_numbers<[1], [0], [0], [1], [0, 0, 1, 1], [], []>} : vector<2x32xbf16>, vector<32x32xbf16>, vector<2x32xf32> -> vector<2x32xf32>
    %351 = arith.addf %347, %350 : vector<2x32xf32>
    %352 = arith.index_cast %c3_i32 : i32 to index
    %c0_142 = arith.constant 0 : index
    %c0_143 = arith.constant 0 : index
    %353 = vector.load %arg13[%352, %c0_142, %c0_143] : memref<4x2x32xf32, #tpu.memory_space<vmem>>, vector<1x2x32xf32>
    %354 = vector.shape_cast %353 : vector<1x2x32xf32> to vector<2x32xf32>
    %355 = vector.shape_cast %344 : vector<2x32xf32> to vector<1x2x32xf32>
    tpu.vector_store %arg13[%352, %c0_142, %c0_143], %355 {strides = array<i32>} : memref<4x2x32xf32, #tpu.memory_space<vmem>>, vector<1x2x32xf32>,
    %356 = arith.index_cast %c3_i32 : i32 to index
    %c0_144 = arith.constant 0 : index
    %c0_145 = arith.constant 0 : index
    %357 = vector.load %arg14[%356, %c0_144, %c0_145] : memref<4x2x32xf32, #tpu.memory_space<vmem>>, vector<1x2x32xf32>
    %358 = vector.shape_cast %357 : vector<1x2x32xf32> to vector<2x32xf32>
    %359 = vector.shape_cast %351 : vector<2x32xf32> to vector<1x2x32xf32>
    tpu.vector_store %arg14[%356, %c0_144, %c0_145], %359 {strides = array<i32>} : memref<4x2x32xf32, #tpu.memory_space<vmem>>, vector<1x2x32xf32>,
    %c4_i32 = arith.constant 4 : i32
    %c0_146 = arith.constant 0 : index
    %c0_147 = arith.constant 0 : index
    %360 = vector.load %arg16[%c0_146, %c0_147] : memref<2x32xf32, #tpu.memory_space<vmem>>, vector<2x32xf32>
    tpu.vector_store %arg16[%c0_146, %c0_147], %344 {strides = array<i32>} : memref<2x32xf32, #tpu.memory_space<vmem>>, vector<2x32xf32>,
    %c0_148 = arith.constant 0 : index
    %c0_149 = arith.constant 0 : index
    %361 = vector.load %arg15[%c0_148, %c0_149] : memref<2x32xf32, #tpu.memory_space<vmem>>, vector<2x32xf32>
    tpu.vector_store %arg15[%c0_148, %c0_149], %344 {strides = array<i32>} : memref<2x32xf32, #tpu.memory_space<vmem>>, vector<2x32xf32>,
    return
  }
  func.func @transform_0(%arg0: i32, %arg1: i32) -> (i32, i32, i32) {
    %c0_i32 = arith.constant 0 : i32
    %c0_i32_0 = arith.constant 0 : i32
    return %arg1, %arg0, %c0_i32 : i32, i32, i32
  }
  func.func @transform_1(%arg0: i32, %arg1: i32) -> (i32, i32) {
    %c0_i32 = arith.constant 0 : i32
    %c0_i32_0 = arith.constant 0 : i32
    return %arg0, %c0_i32 : i32, i32
  }
  func.func @transform_2(%arg0: i32, %arg1: i32) -> (i32, i32, i32) {
    %c0_i32 = arith.constant 0 : i32
    %c0_i32_0 = arith.constant 0 : i32
    %c0_i32_1 = arith.constant 0 : i32
    return %arg0, %c0_i32, %c0_i32_0 : i32, i32, i32
  }
  func.func @transform_3(%arg0: i32, %arg1: i32) -> (i32, i32, i32) {
    %c0_i32 = arith.constant 0 : i32
    %c0_i32_0 = arith.constant 0 : i32
    %c0_i32_1 = arith.constant 0 : i32
    return %arg0, %c0_i32, %c0_i32_0 : i32, i32, i32
  }
  func.func @transform_4(%arg0: i32, %arg1: i32) -> (i32, i32) {
    %c0_i32 = arith.constant 0 : i32
    %c0_i32_0 = arith.constant 0 : i32
    return %arg0, %c0_i32 : i32, i32
  }
  func.func @transform_5(%arg0: i32, %arg1: i32) -> (i32, i32) {
    %c0_i32 = arith.constant 0 : i32
    %c0_i32_0 = arith.constant 0 : i32
    %c0_i32_1 = arith.constant 0 : i32
    return %c0_i32, %c0_i32_0 : i32, i32
  }
  func.func @transform_6(%arg0: i32, %arg1: i32) -> (i32, i32) {
    %c0_i32 = arith.constant 0 : i32
    %c0_i32_0 = arith.constant 0 : i32
    %c0_i32_1 = arith.constant 0 : i32
    return %c0_i32, %c0_i32_0 : i32, i32
  }
  func.func @transform_7(%arg0: i32, %arg1: i32) -> (i32, i32) {
    %c0_i32 = arith.constant 0 : i32
    %c0_i32_0 = arith.constant 0 : i32
    %c0_i32_1 = arith.constant 0 : i32
    return %c0_i32, %c0_i32_0 : i32, i32
  }
  func.func @transform_8(%arg0: i32, %arg1: i32) -> (i32, i32) {
    %c0_i32 = arith.constant 0 : i32
    %c0_i32_0 = arith.constant 0 : i32
    %c0_i32_1 = arith.constant 0 : i32
    return %c0_i32, %c0_i32_0 : i32, i32
  }
  func.func @transform_9(%arg0: i32, %arg1: i32) -> (i32, i32) {
    %c0_i32 = arith.constant 0 : i32
    %c0_i32_0 = arith.constant 0 : i32
    %c0_i32_1 = arith.constant 0 : i32
    return %c0_i32, %c0_i32_0 : i32, i32
  }
  func.func @transform_10(%arg0: i32, %arg1: i32) -> (i32, i32) {
    %c0_i32 = arith.constant 0 : i32
    %c0_i32_0 = arith.constant 0 : i32
    %c0_i32_1 = arith.constant 0 : i32
    return %c0_i32, %c0_i32_0 : i32, i32
  }
  func.func @transform_11(%arg0: i32, %arg1: i32) -> (i32, i32, i32) {
    %c0_i32 = arith.constant 0 : i32
    %c0_i32_0 = arith.constant 0 : i32
    return %arg1, %arg0, %c0_i32 : i32, i32, i32
  }
  func.func @transform_12(%arg0: i32, %arg1: i32) -> (i32, i32, i32) {
    %c0_i32 = arith.constant 0 : i32
    %c0_i32_0 = arith.constant 0 : i32
    return %arg1, %arg0, %c0_i32 : i32, i32, i32
  }
  func.func @transform_13(%arg0: i32, %arg1: i32) -> (i32, i32) {
    %c0_i32 = arith.constant 0 : i32
    %c0_i32_0 = arith.constant 0 : i32
    return %arg0, %c0_i32 : i32, i32
  }
}

</mosaic_0001>

<bundles_post_ra>
// kernel: tpu_custom_call.1
= control target key start
LH: loop header
LB: loop body
LE: loop exit
PB: predicated region body
PF: predicated region fallthrough
CT: control target
= control target key end

     0   :  { %s4337_s0 = inlined_call_operand.hbm [shape: f32[8,2,128], index: 0, kind: input, shape index: {}]   ;;  %s4338_s1 = inlined_call_operand.vmem [shape: f32[2,32], index: 1, kind: input, shape index: {}]   ;;  %s4339_s2 = inlined_call_operand.hbm [shape: bf16[2,8,64], index: 2, kind: input, shape index: {}]   ;;  %s4340_s3 = inlined_call_operand.hbm [shape: f32[2,8,32], index: 3, kind: input, shape index: {}]   ;;  %s4341_s4 = inlined_call_operand.vmem [shape: f32[2,8], index: 4, kind: input, shape index: {}]   ;;  %s4342_s5 = inlined_call_operand.vmem [shape: f32[1,32], index: 5, kind: input, shape index: {}]   ;;  %s4343_s6 = inlined_call_operand.vmem [shape: bf16[32,128], index: 6, kind: input, shape index: {}]   ;;  %s4344_s7 = inlined_call_operand.hbm [shape: bf16[64,128], index: 7, kind: input, shape index: {}]   ;;  %s4345_s8 = inlined_call_operand.hbm [shape: bf16[32,32], index: 8, kind: input, shape index: {}]   ;;  %s4346_s9 = inlined_call_operand.vmem [shape: f32[1,96], index: 9, kind: input, shape index: {}]   ;;  %s4347_s10 = inlined_call_operand.vmem [shape: f32[1,96], index: 10, kind: input, shape index: {}]   ;;  %s4348_s11 = inlined_call_operand.hbm [shape: f32[8,2,32], index: 11, kind: output, shape index: {0}]   ;;  %s4349_s12 = inlined_call_operand.hbm [shape: f32[8,2,32], index: 12, kind: output, shape index: {1}]   ;;  %s4350_s13 = inlined_call_operand.hbm [shape: f32[2,32], index: 13, kind: output, shape index: {2}]  }
   0x1   :  { %4368 = sst [smem:[#allocation24_spill]] %s4337_s0 }
   0x2   :  { %4369 = sst [smem:[#allocation25_spill]] %s4338_s1 }
   0x3   :  { %4370 = sst [smem:[#allocation26_spill]] %s4339_s2 }
   0x4   :  { %4371 = sst [smem:[#allocation27_spill]] %s4340_s3 }
   0x5   :  { %4372 = sst [smem:[#allocation28_spill]] %s4341_s4 }
   0x6   :  { %4373 = sst [smem:[#allocation29_spill]] %s4342_s5 }
   0x7   :  { %4374 = sst [smem:[#allocation30_spill]] %s4343_s6 }
   0x8   :  { %4375 = sst [smem:[#allocation31_spill]] %s4346_s9 }
   0x9   :  { %4376 = sst [smem:[#allocation32_spill]] %s4347_s10 }
   0xa   :  { %4377 = sst [smem:[#allocation33_spill]] %s4348_s11 }
   0xb   :  { %4378 = sst [smem:[#allocation34_spill]] %s4349_s12 }
   0xc   :  { %4379 = sst [smem:[#allocation35_spill]] %s4350_s13 }
   0xd   :  { %19 = vsyncpa [#allocation4], 0 }
   0xe   :  { %21 = vsyncpa [#allocation4 + $0x1], 0 }
   0xf   :  { %22 = vsyncpa [#allocation7], 0 }
  0x10   :  { %23 = vsyncpa [#allocation10], 0 }
  0x11   :  { %24 = vsyncpa [#allocation5], 0 }
  0x12   :  { %26 = vsyncpa [#allocation5 + $0x1], 0 }
  0x13   :  { %27 = vsyncpa [#allocation14], 0 }
  0x14   :  { %29 = vsyncpa [#allocation14 + $0x1], 0  ;;  %s3555_s25 = smov 0   ;;  %s3557_s26 = smov 0  }
  0x15   :  { %s3559_s27 = smov 0   ;;  %s3561_s28 = smov 0  }
  0x16   :  { %s3563_s29 = smov 0   ;;  %s3565_s30 = smov 0  }
  0x17 LB: > { %4380 = sst [smem:[#allocation22_spill]] %s3441_s25  ;;  %s3586_s14 = sadd.s32 4294967295, %s3461_s30   ;;  %s3461_s30 = sphi %s3565_s30, %s35_s30   ;;  %s3457_s29 = sphi %s3563_s29, %s4426_s29   ;;  %s3453_s28 = sphi %s3561_s28, %s4425_s28   ;;  %s3449_s27 = sphi %s3559_s27, %s4424_s27   ;;  %s3445_s26 = sphi %s3557_s26, %s4423_s26   ;;  %s3441_s25 = sphi %s3555_s25, %s4422_s25  }
  0x18   : > { %s4351_s15 = sadd.s32 4294967294, %s3461_s30   ;;  %p69_p0 = scmp.ne.s32.totalorder %s3445_s26, %s3441_s25 }
  0x19   : > { %p4357_p1 = scmp.eq.s32.totalorder %s3586_s14, 0  ;;  %p331_p3 = scmp.eq.s32.totalorder %s4351_s15, 1 }
  0x1a   : > { %p2666_p5 = scmp.ge.s32.totalorder %s3461_s30, 1  ;;  %p392_p7 = scmp.lt.s32.totalorder %s3461_s30, 3 }
  0x1b   : > { %p3597_p4 = por %p4357_p1, %p69_p0  ;;  %p3602_p6 = por %p331_p3, %p69_p0 }
  0x1c   : > { %p3607_p8 = pnand %p2666_p5, %p392_p7  ;;  %s3463_s19 = smov [#allocation6]  }
  0x1d   : > { %s4381_s16 = scalar_select %p3597_p4, 1, 0 }
  0x1e   : > { %s4382_s17 = scalar_select %p3602_p6, 1, 0 }
  0x1f   : > { %s4384_s18 = scalar_select %p3607_p8, 1, 0 }
  0x20   : > { %4383 = sst [smem:[#allocation23_spill]] %s4382_s17  ;;  %s414_s20 = sshll.u32 %s3463_s19, 4  ;;  %s3611_s20 = int_to_ptr.vmem [resolvable:$true] %s414_s20 }
  0x21   : > { %p2966_p9 = pneg %p3607_p8  ;;  %s3464_s22 = smov [#allocation9]  }
  0x22   : > { %s456_s23 = sshll.u32 %s3464_s22, 4  ;;  %s3465_s24 = smov [#allocation8]   ;;  %s3622_s23 = int_to_ptr.vmem [resolvable:$true] %s456_s23 }
  0x23   : > { %p3618_p11 = pnand %p2966_p9, %p4357_p1  ;;  %s3624_s15 = sshll.u32 %s3465_s24, 4  ;;  %s431_s15 = int_to_ptr.vmem [resolvable:$true] %s3624_s15 }
  0x24   : > { %s4386_s2 = sld [smem:[#allocation26_spill]] }
  0x25   : > { %p3634_p13 = pneg %p3618_p11 }
  0x2a   : > { %s3167_s25 = scalar_lea.hbm %s4386_s2, 128 }
  0x2b   : > { %p3168_p12 = scmp.ne.s32.totalorder %s4386_s2, %s3167_s25  ;;  %p3174_p5 = scmp.lt.u32.totalorder %s3167_s25, %s4386_s2 }
  0x2d   : > { %p3170_p0 = pnand %p3634_p13, %p3168_p12 }
  0x2f   : > { %p3171_p3 = pneg %p3170_p0 }
  0x31   : > { %p3176_p7 = pnand %p3174_p5, %p3171_p3 }
  0x33   : > { %3179 = shalt.err (!%p3176_p7)
}
  0x34   : > { %s3180_s11 = scalar_lea.vmem %s3611_s20, 128  ;;  %p3188_p2 = scmp.lt.s32.totalorder %s3611_s20, %s3611_s20 }
  0x35   : > { %p3181_p9 = scmp.ne.s32.totalorder %s3611_s20, %s3180_s11  ;;  %p3189_p6 = scmp.lt.s32.totalorder %s3180_s11, %s3180_s11 }
  0x37   : > { %p3183_p10 = pnand %p3181_p9, %p3634_p13  ;;  %p3190_p12 = por %p3189_p6, %p3188_p2 }
  0x39   : > { %p3184_p1 = pneg %p3183_p10 }
  0x3b   : > { %p3191_p0 = pnand %p3190_p12, %p3184_p1 }
  0x3d   : > { %3194 = shalt.err (!%p3191_p0)
}
  0x3e   : > { %s4364_s13 = smov 64   ;;  %s4365_s25 = smov 4  }
  0x3f   : > { %2969 = dma.hbm_to_vmem [thread:$0]  (!%p3618_p11), %s4386_s2, 128, %s3611_s20, [#allocation7], %s4364_s13, %s4364_s13, %s4365_s25  }
  0x40   : > { %s3195_s11 = scalar_lea.hbm %s4344_s7, 512 }
  0x41   : > { %p3196_p1 = scmp.ne.s32.totalorder %s4344_s7, %s3195_s11  ;;  %p3202_p10 = scmp.lt.u32.totalorder %s3195_s11, %s4344_s7 }
  0x43   : > { %p3198_p2 = pnand %p3196_p1, %p3634_p13 }
  0x45   : > { %p3199_p6 = pneg %p3198_p2 }
  0x47   : > { %p3204_p3 = pnand %p3202_p10, %p3199_p6 }
  0x49   : > { %3207 = shalt.err (!%p3204_p3)
}
  0x4a   : > { %s3208_s20 = scalar_lea.vmem %s3622_s23, 512  ;;  %p3216_p12 = scmp.lt.s32.totalorder %s3622_s23, %s3622_s23 }
  0x4b   : > { %p3209_p5 = scmp.ne.s32.totalorder %s3622_s23, %s3208_s20  ;;  %p3217_p0 = scmp.lt.s32.totalorder %s3208_s20, %s3208_s20 }
  0x4d   : > { %p3211_p7 = pnand %p3209_p5, %p3634_p13  ;;  %p3218_p1 = por %p3217_p0, %p3216_p12 }
  0x4f   : > { %p3212_p9 = pneg %p3211_p7 }
  0x51   : > { %p3219_p2 = pnand %p3218_p1, %p3212_p9 }
  0x53   : > { %3222 = shalt.err (!%p3219_p2)
}
  0x54   : > { %2975 = dma.hbm_to_vmem [thread:$0]  (!%p3618_p11), %s4344_s7, 512, %s3622_s23, [#allocation10], %s4364_s13, %s4364_s13, %s4365_s25  }
  0x55   : > { %s4388_s3 = sld [smem:[#allocation27_spill]] }
  0x5b   : > { %s3223_s17 = scalar_lea.hbm %s4388_s3, 256 }
  0x5c   : > { %p3224_p6 = scmp.ne.s32.totalorder %s4388_s3, %s3223_s17  ;;  %p3230_p5 = scmp.lt.u32.totalorder %s3223_s17, %s4388_s3 }
  0x5e   : > { %p3226_p10 = pnand %p3224_p6, %p3634_p13 }
  0x60   : > { %p3227_p3 = pneg %p3226_p10 }
  0x62   : > { %p3232_p7 = pnand %p3230_p5, %p3227_p3 }
  0x64   : > { %3235 = shalt.err (!%p3232_p7)
}
  0x65   : > { %s3236_s20 = scalar_lea.vmem %s431_s15, 256  ;;  %p3244_p1 = scmp.lt.s32.totalorder %s431_s15, %s431_s15 }
  0x66   : > { %p3237_p9 = scmp.ne.s32.totalorder %s431_s15, %s3236_s20  ;;  %p3245_p2 = scmp.lt.s32.totalorder %s3236_s20, %s3236_s20 }
  0x68   : > { %p3239_p12 = pnand %p3237_p9, %p3634_p13  ;;  %p3246_p4 = por %p3245_p2, %p3244_p1 }
  0x6a   : > { %p3240_p0 = pneg %p3239_p12 }
  0x6c   : > { %p3247_p8 = pnand %p3246_p4, %p3240_p0 }
  0x6e   : > { %3250 = shalt.err (!%p3247_p8)
}
  0x6f   : > { %s3468_s23 = smov 128   ;;  %s3469_s4 = smov 8  }
  0x70   : > { %2972 = dma.hbm_to_vmem [thread:$0]  (!%p3618_p11), %s4388_s3, 256, %s431_s15, [#allocation7], %s3468_s23, %s3468_s23, %s3469_s4  }
  0x71   : > { %s3470_s10 = smov [#allocation11]   ;;  %s3251_s24 = scalar_lea.hbm %s4345_s8, 256 }
  0x72   : > { %s469_s17 = sshll.u32 %s3470_s10, 4  ;;  %p3252_p4 = scmp.ne.s32.totalorder %s4345_s8, %s3251_s24  ;;  %s470_s17 = int_to_ptr.vmem [resolvable:$true] %s469_s17 }
  0x73   : > { %p3258_p10 = scmp.lt.u32.totalorder %s3251_s24, %s4345_s8 }
  0x74   : > { %p3254_p8 = pnand %p3252_p4, %p3634_p13 }
  0x76   : > { %p3255_p6 = pneg %p3254_p8 }
  0x78   : > { %p3260_p3 = pnand %p3258_p10, %p3255_p6 }
  0x7a   : > { %3263 = shalt.err (!%p3260_p3)
}
  0x7b   : > { %s3264_s15 = scalar_lea.vmem %s470_s17, 256  ;;  %p3272_p12 = scmp.lt.s32.totalorder %s470_s17, %s470_s17 }
  0x7c   : > { %p3265_p5 = scmp.ne.s32.totalorder %s470_s17, %s3264_s15  ;;  %p3273_p0 = scmp.lt.s32.totalorder %s3264_s15, %s3264_s15 }
  0x7e   : > { %p3267_p7 = pnand %p3265_p5, %p3634_p13  ;;  %p3274_p1 = por %p3273_p0, %p3272_p12 }
  0x80   : > { %p3268_p9 = pneg %p3267_p7 }
  0x82   : > { %p3275_p2 = pnand %p3274_p1, %p3268_p9 }
  0x84   : > { %3278 = shalt.err (!%p3275_p2)
}
  0x85   : > { %s4389_s23 = smov 4   ;;  %s4390_s4 = smov 64  }
  0x86   : > { %2978 = dma.hbm_to_vmem [thread:$0]  (!%p3618_p11), %s4345_s8, 256, %s470_s17, [#allocation10], %s4390_s4, %s4390_s4, %s4389_s23  }
  0x87   : > { %s44_s12 = sadd.s32 1, %s3457_s29  ;;  %s56_s21 = sadd.s32 1, %s3449_s27 }
  0x88   : > { %p45_p13 = scmp.ge.s32.totalorder %s44_s12, 2  ;;  %p63_p4 = scmp.ne.s32.totalorder %s3449_s27, %s3445_s26 }
  0x89   : > { %p64_p8 = scmp.eq.s32.totalorder %s3461_s30, 0  ;;  %p2994_p6 = scmp.lt.s32.totalorder %s3461_s30, 2 }
  0x8a   : > { %s4428_s12 = smov (%p45_p13, %s44_s12), 0  ;;  %p4391_p3 = scmp.eq.s32.totalorder %s3586_s14, 1 }
  0x8b   : > { %p65_p10 = por %p64_p8, %p63_p4  ;;  %s51_s9 = ssub.s32 %s3457_s29, %s4428_s12 }
  0x8c   : > { %p3734_p5 = por %p4391_p3, %p63_p4  ;;  %s489_s10 = sand.u32 1, %s3449_s27  }
  0x8d   : > { %p54_p7 = scmp.eq.s32.totalorder %s51_s9, 0  ;;  %s2674_s17 = sshll.u32 %s489_s10, 3 }
  0x8e   : > { %s2765_s19 = sshll.u32 %s3457_s29, 7  ;;  %s4393_s0 = sld [smem:[#allocation24_spill]] }
  0x8f   : > { %s3743_s22 = scalar_select %p54_p7, %s3449_s27, %s56_s21  }
  0x90   : > { %s493_s15 = scalar_lea.vmem [#allocation3], %s2674_s17  ;;  %p3752_p11 = pnand %p2994_p6, %p65_p10 }
  0x91   : > { %s501_s23 = sshll.u32 %s493_s15, 4  ;;  %s3758_s13 = scalar_lea.sflag [#allocation4], %s489_s10  ;;  %s3756_s23 = int_to_ptr.vmem [resolvable:$true] %s501_s23 }
  0x92   : > { %p3281_p12 = pneg %p3752_p11 }
  0x94   : > { %s3748_s20 = scalar_lea.hbm %s4393_s0, %s2765_s19  ;;  %s3284_s17 = scalar_lea.hbm %s4393_s0, 256 }
  0x95   : > { %s3279_s25 = scalar_lea.hbm %s3748_s20, 128  ;;  %p3285_p2 = scmp.lt.u32.totalorder %s3748_s20, %s4393_s0 }
  0x96   : > { %p3280_p9 = scmp.ne.s32.totalorder %s3748_s20, %s3279_s25  ;;  %p3286_p13 = scmp.lt.u32.totalorder %s3284_s17, %s3279_s25 }
  0x97   : > { %p3288_p8 = scmp.lt.u32.totalorder %s3279_s25, %s3748_s20 }
  0x98   : > { %p3282_p0 = pnand %p3281_p12, %p3280_p9  ;;  %p3287_p4 = por %p3286_p13, %p3285_p2 }
  0x9a   : > { %p3283_p1 = pneg %p3282_p0  ;;  %p3289_p6 = por %p3288_p8, %p3287_p4 }
  0x9c   : > { %p3290_p10 = pnand %p3289_p6, %p3283_p1 }
  0x9e   : > { %3293 = shalt.err (!%p3290_p10)
}
  0x9f   : > { %s3294_s10 = scalar_lea.vmem %s3756_s23, 128  ;;  %s3471_s11 = smov [#allocation3]  }
  0xa0   : > { %p3295_p3 = scmp.ne.s32.totalorder %s3756_s23, %s3294_s10  ;;  %s3299_s15 = sshll.u32 %s3471_s11, 4  ;;  %s3300_s15 = int_to_ptr.vmem [resolvable:$false] %s3299_s15 }
  0xa1   : > { %s3301_s21 = scalar_lea.vmem %s3300_s15, 256  ;;  %p3302_p0 = scmp.lt.s32.totalorder %s3756_s23, %s3300_s15 }
  0xa2   : > { %p3297_p7 = pnand %p3295_p3, %p3281_p12  ;;  %p3303_p2 = scmp.lt.s32.totalorder %s3301_s21, %s3294_s10 }
  0xa4   : > { %p3298_p9 = pneg %p3297_p7  ;;  %p3304_p13 = por %p3303_p2, %p3302_p0 }
  0xa6   : > { %p3305_p4 = pnand %p3304_p13, %p3298_p9 }
  0xa8   : > { %3308 = shalt.err (!%p3305_p4)
}
  0xa9   : > { %s3472_s25 = smov 32   ;;  %s3473_s9 = smov 2  }
  0xaa   : > { %2982 = dma.hbm_to_vmem [thread:$0]  (!%p3752_p11), %s3748_s20, 128, %s3756_s23, %s3758_s13, %s3472_s25, %s3472_s25, %s3473_s9  }
  0xab   : > { %p4395_p12 = scmp.ne.s32.totalorder %s4384_s18, 0 }
  0xac   : > { %s3789_s17 = sand.u32 (!%p4395_p12), 1, %s3445_s26   ;;  %p4396_p1 = scmp.ne.s32.totalorder (!%p4395_p12), %s4381_s16, 0 }
  0xad   : > { %513 = sbr.rel (%p4395_p12) target bundleno = 7668 (0x1df4), region = 64  ;;  %s2678_s19 = sshll.u32 (!%p4395_p12), %s3789_s17, 3 }
  0xae   : > { %s516_s24 = scalar_lea.sflag (!%p4395_p12), [#allocation4], %s3789_s17  ;;  %s3793_s10 = scalar_lea.vmem (!%p4395_p12), [#allocation3], %s2678_s19 }
  0xb4   : > { %3416 = dma.done.wait (%p4396_p1), %s516_s24, 128  }
  0xb5   : > { %3418 = vsyncadd (%p4396_p1), %s516_s24, 4294967168  ;;  %p4397_p11 = scmp.eq.s32.totalorder %s3586_s14, 0 }
  0xb7   : > { %3420 = dma.done.wait (%p4397_p11), [#allocation7], 384   ;;  %p4398_p8 = pmov %p4397_p11 }
  0xb9   : > { %3422 = vsyncadd (%p4398_p8), [#allocation7], 4294966912  ;;  %p4399_p6 = pmov %p4398_p8 }
  0xbb   : > { %3424 = dma.done.wait (%p4399_p6), [#allocation10], 768   ;;  %p4400_p10 = pmov %p4399_p6 }
  0xbc   : > { %s3807_s18 = scalar_lea.vmem [#allocation12], %s2678_s19  ;;  %s3809_s20 = scalar_lea.vmem [#allocation13], %s2678_s19 }
  0xbd   : > { %3426 = vsyncadd (%p4400_p10), [#allocation10], 4294966528  ;;  %p2685_p3 = scmp.ne.s32.totalorder %s3453_s28, 0 }
  0xbe   : > { %s4401_s1 = sld [smem:[#allocation25_spill]] (!%p2685_p3)  ;;  %vm610_vm0 = vcmask (!%p2685_p3), 254976  }
  0xbf   : > { %608 = sbr.rel (%p2685_p3) target bundleno = 198 (0xc6), region = 88 }
  0xc4   : > { %v609_v0 = vld [vmem:[%s4401_s1] sm:$0x3] (!%p2685_p3) }
  0xc5   : > { %611 = vst.msk [vmem:[#allocation2] sm:$0x3] (!%p2685_p3), %vm610_vm0, %v609_v0 }
  0xc6 PF: > { %s4402_s6 = sld [smem:[#allocation30_spill]]  ;;  %v3474_v2 = vmov 0.0   ;;  %vm3475_vm1 = vmmov 0   ;;  %vm630_vm2 = vcmask 261120   ;;  %v678_v6 = vlaneseq  ;;  %s4403_s9 = sld [smem:[#allocation28_spill]]  ;;  %v3854_v26 = vld [vmem:[#allocation8] sm:$0xff] }
  0xc7   : > { %2828 = vmatprep.subr.bf16.mxu0 %v3474_v2  ;;  %2836 = vmatprep.subr.bf16.mxu1 %v3474_v2  ;;  %v3476_v15 = vmov 1966171168   ;;  %v3858_v29 = vld [vmem:[#allocation8 + $0x8] sm:$0xff]  ;;  %s4404_s16 = sld [smem:[#allocation29_spill]]  ;;  %v3477_v40 = vmov 0   ;;  %vm766_vm3 = vcmask 1041409  }
  0xc8   : > { %2832 = vmatprep.mubr.msk.bf16.mxu0 %vm3475_vm1, %v3474_v2  ;;  %2844 = vmatprep.mubr.msk.bf16.mxu1 %vm3475_vm1, %v3474_v2  ;;  %v679_v7 = vshrl.u32 %v678_v6, 7  ;;  %v757_v8 = vand.u32 127, %v678_v6  ;;  %v676_v16 = vunpack.c.l.s4 %v3476_v15  ;;  %vm769_vm4 = vcmask 58368   ;;  %s4405_s13 = sld [smem:[#allocation32_spill]]  ;;  %s4366_s11 = smov 32  }
  0xc9   : > { %3069 = vset.pattern.permute.xlu0 %v3477_v40  ;;  %3070 = vset.pattern.permute.xlu1 %v3477_v40  ;;  %vm841_vm5 = vcmask 523264   ;;  %s3479_s15 = smov 96   ;;  %s4406_s19 = sld [smem:[#allocation31_spill]]  ;;  %vm1064_vm6 = vcmask 254976  }
  0xca   : > { %v3836_v9 = vsub.s32 %v757_v8, %v679_v7  ;;  %v3838_v10 = vsub.s32 0, %v679_v7  ;;  %v3843_v12 = vsub.s32 1, %v679_v7  ;;  %v677_v17 = vunpack.c.0.s8 %v676_v16  ;;  %v3073_v16 = vld [vmem:[#allocation9] sm:$0xff]   ;;  %s3480_s24 = smov 64   ;;  %s2448_s23 = sshll.u32 %s3809_s20, 4  ;;  %s4206_s23 = int_to_ptr.vmem [resolvable:$true] %s2448_s23 }
  0xcb   : > { %2837 = vmatpush3.bf16.msra.mxu1 %v3073_v16  ;;  %s4407_s25 = sld [smem:[#allocation34_spill]]  ;;  %s3482_s4 = smov [#allocation13]  }
  0xcc   : > { %v3071_v1 = vld [vmem:[%s4402_s6] sm:$0xff]   ;;  %v3072_v3 = vld [vmem:[%s4402_s6 + $0x8] sm:$0xff]   ;;  %v3847_v18 = vsub.s32 %v677_v17, %v679_v7  ;;  %2838 = vmatprep.subr.bf16.mxu1 %v3474_v2  ;;  %v3074_v17 = vld [vmem:[#allocation9 + $0x8] sm:$0xff]   ;;  %s3313_s21 = sshll.u32 %s3482_s4, 4  ;;  %s3314_s21 = int_to_ptr.vmem [resolvable:$false] %s3313_s21 }
  0xcd   : > { %2829 = vmatpush3.bf16.msra.mxu0 %v3071_v1  ;;  %v3825_v4 = vld [vmem:[#allocation2] sm:$0x3]  ;;  %p3316_p2 = scmp.lt.s32.totalorder %s4206_s23, %s3314_s21 }
  0xce   : > { %2830 = vmatprep.subr.bf16.mxu0 %v3474_v2  ;;  %v613_v5 = vpack.c.bf16 %v3825_v4, %v3825_v4  ;;  %v728_v11 = vld [vmem:[%s4403_s9] sm:$0x3] }
  0xcf   : > { %v733_v13 = vrot.slane %v728_v11, %v3838_v10  ;;  %v740_v14 = vrot.slane %v728_v11, %v3843_v12  ;;  %v3866_v33 = vld [vmem:[%s4404_s16] ss:$0 sm:$0xff]  ;;  %2839 = vmatpush3.bf16.msra.mxu1 %v3074_v17 }
  0xd0   : > { %v3887_v15 = vld [vmem:[%s4405_s13] ss:$0 sm:$0xff]  ;;  %2840 = vmatprep.subr.bf16.mxu1 %v3474_v2 }
  0xd1   : > { %2831 = vmatpush3.bf16.msra.mxu0 %v3072_v3  ;;  %735 = vbcast.lane.b32.xlu1 %v733_v13, 256  ;;  %s4408_s0 = smov %s4407_s25 }
  0xd2   : > { %2848 = vmatprep.subr.bf16.mxu0 %v3474_v2 }
  0xd4   : > { %2833 = vmatmul.mubr.msk.bf16.vlgmr.msra.gmra.mrb[0].mxu0 %vm630_vm2, %v613_v5 }
  0xd5   : > { %2852 = vmatprep.mubr.msk.bf16.mxu0 %vm3475_vm1, %v3474_v2  ;;  %742 = vbcast.lane.b32.xlu1 %v740_v14, 256 }
 0x143   : > { %v736_v41 = vpop.permute.xlu1 %735 }
 0x147   : > { %v743_v44 = vpop.permute.xlu1 %742 }
 0x1a7   : > { %v3849_v19 = vpop.f32.mrb[0].mxu0 }
 0x1a8   : > { %v681_v20 = vrot.slane %v3849_v19, %v3847_v18  ;;  %v2834_v21 = vpop.f32.mrb[1].mxu0 }
 0x1a9   : > { %v671_v22 = vpop.f32.mrb[2].mxu0  ;;  %v3076_v21 = vld [vmem:[#allocation9 + $0x18] sm:$0xff]  }
 0x1aa   : > { %v682_v23 = vcombine.high %v681_v20, %v681_v20  ;;  %v689_v24 = vrot.slane %v681_v20, %v3847_v18  ;;  %v2835_v25 = vpop.f32.mrb[3].mxu0  ;;  %v3075_v20 = vld [vmem:[#allocation9 + $0x10] sm:$0xff]   ;;  %v2769_v22 = vld [vmem:[#allocation6] sm:$0xff]  }
 0x1ab   : > { %2841 = vmatpush3.bf16.msra.mxu1 %v3075_v20 }
 0x1ac   : > { %v696_v27 = vrot.slane %v682_v23, %v3847_v18  ;;  %v702_v28 = vrot.slane %v689_v24, %v3838_v10  ;;  %2842 = vmatprep.subr.bf16.mxu1 %v3474_v2  ;;  %v3895_v23 = vunpack.c.l.bf16 %v2769_v22 }
 0x1ae   : > { %v706_v30 = vrot.slane %v696_v27, %v3838_v10  ;;  %v709_v31 = vadd.f32 %v702_v28, %v3854_v26  ;;  %v3898_v27 = vunpack.c.h.bf16 %v2769_v22 }
 0x1af   : > { %2843 = vmatpush3.bf16.msra.mxu1 %v3076_v21 }
 0x1b0   : > { %v710_v32 = vadd.f32 %v706_v30, %v3858_v29  ;;  %3103 = vtanh.f32 %v709_v31  ;;  %2864 = vmatprep.subr.bf16.mxu1 %v3474_v2 }
 0x1b2   : > { %3105 = vtanh.f32 %v710_v32 }
 0x1ba   : > { %v3104_v34 = vpop.eup %3103 }
 0x1bb   : > { %v720_v35 = vmul.f32 %v3104_v34, %v3866_v33 }
 0x1bc   : > { %v3106_v36 = vpop.eup %3105 }
 0x1bd   : > { %v722_v37 = vsel %vm630_vm2, %v720_v35, 0.0  ;;  %v721_v38 = vmul.f32 %v3106_v36, %v3866_v33 }
 0x1be   : > { %723 = vadd.xlane.f32.xlu0 %v722_v37 }
 0x1bf   : > { %v725_v39 = vsel %vm630_vm2, %v721_v38, 0.0 }
 0x1c2   : > { %726 = vadd.xlane.f32.xlu0 %v725_v39 }
 0x24b   : > { %v724_v42 = vpop.xlane.xlu0 %723 }
 0x24c   : > { %v746_v43 = vadd.f32 %v736_v41, %v724_v42 }
 0x24e   : > { %751 = vperm.xlu0 %3069, %v746_v43  }
 0x24f   : > { %v727_v45 = vpop.xlane.xlu0 %726 }
 0x250   : > { %v747_v46 = vadd.f32 %v743_v44, %v727_v45 }
 0x252   : > { %754 = vperm.xlu1 %3070, %v747_v46  }
 0x2cd   : > { %v752_v47 = vpop.permute.xlu0 %751 }
 0x2ce   : > { %v761_v49 = vrot.slane %v752_v47, %v3836_v9 }
 0x2d1   : > { %v755_v48 = vpop.permute.xlu1 %754 }
 0x2d2   : > { %v765_v50 = vrot.slane %v755_v48, %v3836_v9 }
 0x2d4   : > { %v767_v51 = vsel %vm766_vm3, %v765_v50, %v761_v49 }
 0x2d5   : > { %v770_v52 = vsel %vm769_vm4, %v767_v51, -inf }
 0x2d6   : > { %771 = vmax.xlane.f32.xlu1 %v770_v52 }
 0x363   : > { %v772_v53 = vpop.xlane.xlu1 %771 }
 0x364   : > { %v777_v54 = vrot.slane %v772_v53, %v3838_v10  ;;  %v781_v55 = vrot.slane %v772_v53, %v3843_v12  ;;  %v939_v53 = vld [vmem:[%s3793_s10] sm:$0x3] }
 0x366   : > { %v784_v56 = vsub.f32 %v746_v43, %v777_v54  ;;  %v785_v57 = vsub.f32 %v747_v46, %v781_v55  ;;  %v3914_v55 = vld [vmem:[%s4406_s19] ss:$0 sm:$0xff] }
 0x368   : > { %v786_v58 = vmul.f32 1.442695, %v784_v56  ;;  %v788_v59 = vmul.f32 1.442695, %v785_v57 }
 0x36a   : > { %3107 = vpow2.f32 %v786_v58 }
 0x36b   : > { %3109 = vpow2.f32 %v788_v59 }
 0x374   : > { %v3108_v60 = vpop.eup %3107 }
 0x375   : > { %v3110_v61 = vpop.eup %3109  ;;  %793 = vperm.xlu1 %3070, %v3108_v60  }
 0x376   : > { %796 = vperm.xlu0 %3069, %v3110_v61  }
 0x3f4   : > { %v794_v62 = vpop.permute.xlu1 %793 }
 0x3f5   : > { %v797_v63 = vpop.permute.xlu0 %796  ;;  %v801_v0 = vrot.slane %v794_v62, %v3836_v9 }
 0x3f6   : > { %v805_v1 = vrot.slane %v797_v63, %v3836_v9 }
 0x3f8   : > { %v806_v3 = vsel %vm766_vm3, %v805_v1, %v801_v0 }
 0x3f9   : > { %v808_v5 = vsel %vm769_vm4, %v806_v3, 0.0 }
 0x3fa   : > { %809 = vadd.xlane.f32.xlu0 %v808_v5 }
 0x487   : > { %v810_v6 = vpop.xlane.xlu0 %809 }
 0x488   : > { %3111 = vrcp.f32 %v810_v6 }
 0x492   : > { %v3112_v7 = vpop.eup %3111 }
 0x493   : > { %v816_v8 = vrot.slane %v3112_v7, %v3838_v10  ;;  %v820_v13 = vrot.slane %v3112_v7, %v3843_v12 }
 0x495   : > { %v823_v11 = vmul.f32 %v3108_v60, %v816_v8  ;;  %v824_v14 = vmul.f32 %v3110_v61, %v820_v13  ;;  %v3078_v13 = vld [vmem:[#allocation11 + $0x8] sm:$0xff]  }
 0x497   : > { %831 = vperm.xlu1 %3070, %v823_v11   ;;  %v3077_v11 = vld [vmem:[#allocation11] sm:$0xff]  }
 0x498   : > { %2849 = vmatpush3.bf16.msra.mxu0 %v3077_v11 }
 0x499   : > { %2850 = vmatprep.subr.bf16.mxu0 %v3474_v2 }
 0x49b   : > { %836 = vperm.xlu1 %3070, %v824_v14  }
 0x49c   : > { %2851 = vmatpush3.bf16.msra.mxu0 %v3078_v13 }
 0x49d   : > { %2856 = vmatprep.subr.bf16.mxu0 %v3474_v2 }
 0x49f   : > { %955 = vrot.lane.b32.xlu1 %v3887_v15, %s4366_s11 }
 0x516   : > { %v832_v24 = vpop.permute.xlu1 %831 }
 0x517   : > { %v839_v25 = vmul.f32 %v3895_v23, %v832_v24 }
 0x519   : > { %v842_v28 = vsel %vm841_vm5, %v839_v25, 0.0  ;;  %v3079_v25 = vld [vmem:[%s4402_s6] sm:$0xff]  }
 0x51a   : > { %v843_v30 = vrot.slane %v842_v28, 4  ;;  %v837_v31 = vpop.permute.xlu1 %836 }
 0x51b   : > { %v840_v32 = vmul.f32 %v3898_v27, %v837_v31 }
 0x51c   : > { %v844_v34 = vadd.f32 %v843_v30, %v842_v28  ;;  %v3080_v30 = vld [vmem:[%s4402_s6 + $0x8] sm:$0xff]  }
 0x51d   : > { %v849_v35 = vsel %vm841_vm5, %v840_v32, 0.0 }
 0x51e   : > { %v845_v36 = vrot.slane %v844_v34, 2  ;;  %v850_v37 = vrot.slane %v849_v35, 4  ;;  %v956_v38 = vpop.permute.xlu1 %955 }
 0x51f   : > { %v958_v39 = vadd.f32 %v956_v38, %v3849_v19 }
 0x520   : > { %v846_v40 = vadd.f32 %v845_v36, %v844_v34  ;;  %v851_v41 = vadd.f32 %v850_v37, %v849_v35 }
 0x521   : > { %960 = vrot.lane.b32.xlu1 %v958_v39, %s3479_s15 }
 0x522   : > { %v847_v42 = vrot.slane %v846_v40, 1  ;;  %v852_v43 = vrot.slane %v851_v41, 2 }
 0x524   : > { %v848_v44 = vadd.f32 %v847_v42, %v846_v40  ;;  %v853_v45 = vadd.f32 %v852_v43, %v851_v41 }
 0x525   : > { %970 = vrot.lane.b32.xlu1 %v958_v39, %s4366_s11 }
 0x526   : > { %v854_v46 = vrot.slane %v853_v45, 1  ;;  %v856_v47 = vpack.c.bf16 %v848_v44, %v848_v44 }
 0x528   : > { %v855_v48 = vadd.f32 %v854_v46, %v853_v45  ;;  %v868_v50 = vunpack.c.l.b16 %v856_v47 }
 0x52a   : > { %v857_v49 = vpack.c.bf16 %v855_v48, %v855_v48 }
 0x52c   : > { %v869_v51 = vunpack.c.l.b16 %v857_v49 }
 0x52e   : > { %v870_v19 = vsel %vm766_vm3, %v869_v51, %v868_v50 }
 0x52f   : > { %v871_v52 = vpack.c.b16 %v870_v19, %v870_v19 }
 0x531   : > { %2845 = vmatmul.mubr.msk.bf16.vlgmr.msra.gmra.mrb[0].mxu1 %vm841_vm5, %v871_v52 }
 0x532   : > { %2872 = vmatprep.mubr.msk.bf16.mxu1 %vm3475_vm1, %v3474_v2 }
 0x593   : > { %v961_v61 = vpop.permute.xlu1 %960 }
 0x597   : > { %v971_v5 = vpop.permute.xlu1 %970 }
 0x604   : > { %v933_v54 = vpop.f32.mrb[0].mxu1 }
 0x605   : > { %v3916_v56 = vadd.f32 %v939_v53, %v933_v54  ;;  %v2846_v57 = vpop.f32.mrb[1].mxu1  ;;  %v1181_v53 = vld [vmem:[%s4403_s9] sm:$0x3] }
 0x606   : > { %v936_v58 = vpop.f32.mrb[2].mxu1  ;;  %v1186_v54 = vrot.slane %v1181_v53, %v3838_v10  ;;  %v1193_v57 = vrot.slane %v1181_v53, %v3843_v12 }
 0x607   : > { %v948_v59 = vadd.f32 %v3914_v55, %v3916_v56  ;;  %v2847_v60 = vpop.f32.mrb[3].mxu1 }
 0x609   : > { %v963_v62 = vadd.f32 %v961_v61, %v948_v59 }
 0x60b   : > { %v2697_v63 = vmul.f32 -1.442695, %v963_v62 }
 0x60d   : > { %3113 = vpow2.f32 %v2697_v63 }
 0x617   : > { %v3114_v0 = vpop.eup %3113 }
 0x618   : > { %v967_v1 = vadd.f32 1.0, %v3114_v0 }
 0x61a   : > { %3115 = vrcp.f32 %v967_v1 }
 0x624   : > { %v3116_v3 = vpop.eup %3115 }
 0x625   : > { %v973_v6 = vmul.f32 %v3116_v3, %v971_v5  ;;  %v980_v17 = vsub.f32 1.0, %v3116_v3 }
 0x627   : > { %975 = vrot.lane.b32.xlu1 %v973_v6, %s3480_s24 }
 0x62b   : > { %987 = vrot.lane.b32.xlu1 %v3825_v4, %s4366_s11 }
 0x699   : > { %v976_v7 = vpop.permute.xlu1 %975 }
 0x69a   : > { %v978_v8 = vadd.f32 %v976_v7, %v948_v59 }
 0x69c   : > { %3117 = vtanh.f32 %v978_v8 }
 0x69d   : > { %v988_v16 = vpop.permute.xlu1 %987 }
 0x69e   : > { %v990_v21 = vmul.f32 %v3116_v3, %v988_v16 }
 0x6a6   : > { %v3118_v14 = vpop.eup %3117 }
 0x6a7   : > { %982 = vrot.lane.b32.xlu0 %v3118_v14, %s3479_s15 }
 0x719   : > { %v983_v20 = vpop.permute.xlu0 %982 }
 0x71a   : > { %v985_v22 = vmul.f32 %v983_v20, %v980_v17 }
 0x71c   : > { %v3926_v4 = vadd.f32 %v990_v21, %v985_v22 }
 0x71e   : > { %v992_v24 = vpack.c.bf16 %v3926_v4, %v3926_v4 }
 0x720   : > { %998 = vrot.lane.b32.xlu1 %v992_v24, %s3479_s15 }
 0x792   : > { %v999_v28 = vpop.permute.xlu1 %998 }
 0x793   : > { %2853 = vmatmul.mubr.msk.bf16.vlgmr.msra.gmra.mrb[4].mxu0 %vm630_vm2, %v999_v28 }
 0x794   : > { %2857 = vmatpush3.bf16.msra.mxu0 %v3079_v25  ;;  %2860 = vmatprep.mubr.msk.bf16.mxu0 %vm3475_vm1, %v3474_v2 }
 0x795   : > { %2858 = vmatprep.subr.bf16.mxu0 %v3474_v2 }
 0x798   : > { %2859 = vmatpush3.bf16.msra.mxu0 %v3080_v30 }
 0x799   : > { %2876 = vmatprep.subr.bf16.mxu0 %v3474_v2 }
 0x79b   : > { %2861 = vmatmul.mubr.msk.bf16.vlgmr.msra.gmra.mrb[8].mxu0 %vm630_vm2, %v999_v28 }
 0x79c   : > { %2880 = vmatprep.mubr.msk.bf16.mxu0 %vm3475_vm1, %v3474_v2 }
 0x866   : > { %v3945_v31 = vpop.f32.mrb[4].mxu0 }
 0x867   : > { %v2854_v32 = vpop.f32.mrb[5].mxu0 }
 0x868   : > { %v1052_v34 = vpop.f32.mrb[6].mxu0 }
 0x869   : > { %v2855_v35 = vpop.f32.mrb[7].mxu0 }
 0x86e   : > { %v3947_v36 = vpop.f32.mrb[8].mxu0 }
 0x86f   : > { %v1134_v37 = vrot.slane %v3947_v36, %v3847_v18  ;;  %v2862_v38 = vpop.f32.mrb[9].mxu0 }
 0x870   : > { %v1124_v39 = vpop.f32.mrb[10].mxu0 }
 0x871   : > { %v1135_v40 = vcombine.high %v1134_v37, %v1134_v37  ;;  %v1142_v41 = vrot.slane %v1134_v37, %v3847_v18  ;;  %v2863_v42 = vpop.f32.mrb[11].mxu0 }
 0x872   : > { %v3081_v42 = vld [vmem:[#allocation9] sm:$0xff]  }
 0x873   : > { %v1149_v43 = vrot.slane %v1135_v40, %v3847_v18  ;;  %v1155_v44 = vrot.slane %v1142_v41, %v3838_v10  ;;  %2865 = vmatpush3.bf16.msra.mxu1 %v3081_v42 }
 0x874   : > { %2866 = vmatprep.subr.bf16.mxu1 %v3474_v2 }
 0x875   : > { %v1159_v45 = vrot.slane %v1149_v43, %v3838_v10  ;;  %v1162_v46 = vadd.f32 %v1155_v44, %v3854_v26  ;;  %v3082_v43 = vld [vmem:[#allocation9 + $0x8] sm:$0xff]   ;;  %v3083_v44 = vld [vmem:[#allocation9 + $0x10] sm:$0xff]  }
 0x877   : > { %v1163_v47 = vadd.f32 %v1159_v45, %v3858_v29  ;;  %3119 = vtanh.f32 %v1162_v46  ;;  %2867 = vmatpush3.bf16.msra.mxu1 %v3082_v43  ;;  %v3084_v45 = vld [vmem:[#allocation9 + $0x18] sm:$0xff]  }
 0x878   : > { %2868 = vmatprep.subr.bf16.mxu1 %v3474_v2 }
 0x879   : > { %3121 = vtanh.f32 %v1163_v47 }
 0x87b   : > { %2869 = vmatpush3.bf16.msra.mxu1 %v3083_v44 }
 0x87c   : > { %2870 = vmatprep.subr.bf16.mxu1 %v3474_v2 }
 0x87f   : > { %2871 = vmatpush3.bf16.msra.mxu1 %v3084_v45 }
 0x880   : > { %2892 = vmatprep.subr.bf16.mxu1 %v3474_v2 }
 0x881   : > { %v3120_v48 = vpop.eup %3119 }
 0x882   : > { %v1173_v49 = vmul.f32 %v3120_v48, %v3866_v33 }
 0x883   : > { %v3122_v50 = vpop.eup %3121 }
 0x884   : > { %v1175_v51 = vsel %vm630_vm2, %v1173_v49, 0.0  ;;  %v1174_v19 = vmul.f32 %v3122_v50, %v3866_v33 }
 0x885   : > { %1176 = vadd.xlane.f32.xlu1 %v1175_v51 }
 0x886   : > { %v1178_v52 = vsel %vm630_vm2, %v1174_v19, 0.0 }
 0x887   : > { %1179 = vadd.xlane.f32.xlu0 %v1178_v52 }
 0x896   : > { %1188 = vbcast.lane.b32.xlu1 %v1186_v54, 256 }
 0x89d   : > { %1195 = vbcast.lane.b32.xlu0 %v1193_v57, 256 }
 0x912   : > { %v1177_v58 = vpop.xlane.xlu1 %1176 }
 0x914   : > { %v1180_v59 = vpop.xlane.xlu0 %1179 }
 0x916   : > { %v1189_v60 = vpop.permute.xlu1 %1188 }
 0x917   : > { %v1199_v61 = vadd.f32 %v1189_v60, %v1177_v58 }
 0x918   : > { %v1196_v62 = vpop.permute.xlu0 %1195 }
 0x919   : > { %1204 = vperm.xlu1 %3070, %v1199_v61   ;;  %v1200_v63 = vadd.f32 %v1196_v62, %v1180_v59 }
 0x91d   : > { %1207 = vperm.xlu1 %3070, %v1200_v63  }
 0x998   : > { %v1205_v0 = vpop.permute.xlu1 %1204 }
 0x999   : > { %v1212_v3 = vrot.slane %v1205_v0, %v3836_v9 }
 0x99c   : > { %v1208_v1 = vpop.permute.xlu1 %1207 }
 0x99d   : > { %v1216_v5 = vrot.slane %v1208_v1, %v3836_v9 }
 0x99f   : > { %v1217_v6 = vsel %vm766_vm3, %v1216_v5, %v1212_v3 }
 0x9a0   : > { %v1219_v7 = vsel %vm769_vm4, %v1217_v6, -inf }
 0x9a1   : > { %1220 = vmax.xlane.f32.xlu1 %v1219_v7 }
 0xa2e   : > { %v1221_v8 = vpop.xlane.xlu1 %1220 }
 0xa2f   : > { %v1226_v11 = vrot.slane %v1221_v8, %v3838_v10  ;;  %v1230_v13 = vrot.slane %v1221_v8, %v3843_v12 }
 0xa31   : > { %v1233_v14 = vsub.f32 %v1199_v61, %v1226_v11  ;;  %v1234_v16 = vsub.f32 %v1200_v63, %v1230_v13  ;;  %v2710_v13 = vld [vmem:[%s3793_s10 + $0x2] sm:$0x3] }
 0xa33   : > { %v1235_v17 = vmul.f32 1.442695, %v1233_v14  ;;  %v1237_v20 = vmul.f32 1.442695, %v1234_v16 }
 0xa35   : > { %3123 = vpow2.f32 %v1235_v17 }
 0xa36   : > { %3125 = vpow2.f32 %v1237_v20 }
 0xa3f   : > { %v3124_v21 = vpop.eup %3123 }
 0xa40   : > { %1242 = vperm.xlu0 %3069, %v3124_v21   ;;  %v3126_v22 = vpop.eup %3125 }
 0xa44   : > { %1245 = vperm.xlu0 %3069, %v3126_v22  }
 0xabf   : > { %v1243_v24 = vpop.permute.xlu0 %1242 }
 0xac0   : > { %v1250_v28 = vrot.slane %v1243_v24, %v3836_v9 }
 0xac3   : > { %v1246_v25 = vpop.permute.xlu0 %1245 }
 0xac4   : > { %v1254_v30 = vrot.slane %v1246_v25, %v3836_v9 }
 0xac6   : > { %v1255_v32 = vsel %vm766_vm3, %v1254_v30, %v1250_v28 }
 0xac7   : > { %v1257_v34 = vsel %vm769_vm4, %v1255_v32, 0.0 }
 0xac8   : > { %1258 = vadd.xlane.f32.xlu0 %v1257_v34 }
 0xb55   : > { %v1259_v35 = vpop.xlane.xlu0 %1258 }
 0xb56   : > { %3127 = vrcp.f32 %v1259_v35 }
 0xb60   : > { %v3128_v37 = vpop.eup %3127 }
 0xb61   : > { %v1269_v38 = vrot.slane %v3128_v37, %v3843_v12  ;;  %v1265_v39 = vrot.slane %v3128_v37, %v3838_v10 }
 0xb63   : > { %v1273_v40 = vmul.f32 %v3126_v22, %v1269_v38  ;;  %v1272_v41 = vmul.f32 %v3124_v21, %v1265_v39 }
 0xb65   : > { %1285 = vperm.xlu0 %3069, %v1273_v40   ;;  %1280 = vperm.xlu1 %3070, %v1272_v41   ;;  %v3085_v40 = vld [vmem:[#allocation11] sm:$0xff]   ;;  %v3086_v41 = vld [vmem:[#allocation11 + $0x8] sm:$0xff]  }
 0xb66   : > { %2877 = vmatpush3.bf16.msra.mxu0 %v3085_v40 }
 0xb67   : > { %2878 = vmatprep.subr.bf16.mxu0 %v3474_v2 }
 0xb69   : > { %1404 = vrot.lane.b32.xlu1 %v3887_v15, %s4366_s11 }
 0xb6a   : > { %2879 = vmatpush3.bf16.msra.mxu0 %v3086_v41 }
 0xb6b   : > { %2884 = vmatprep.subr.bf16.mxu0 %v3474_v2 }
 0xbe4   : > { %v1286_v46 = vpop.permute.xlu0 %1285  ;;  %v1281_v47 = vpop.permute.xlu1 %1280 }
 0xbe5   : > { %v1289_v48 = vmul.f32 %v3898_v27, %v1286_v46  ;;  %v1288_v49 = vmul.f32 %v3895_v23, %v1281_v47 }
 0xbe7   : > { %v1297_v50 = vsel %vm841_vm5, %v1289_v48, 0.0  ;;  %v1290_v51 = vsel %vm841_vm5, %v1288_v49, 0.0  ;;  %v3087_v49 = vld [vmem:[%s4402_s6] sm:$0xff]  }
 0xbe8   : > { %v1298_v19 = vrot.slane %v1297_v50, 4  ;;  %v1291_v52 = vrot.slane %v1290_v51, 4  ;;  %v1405_v53 = vpop.permute.xlu1 %1404 }
 0xbe9   : > { %v1407_v54 = vadd.f32 %v1405_v53, %v3947_v36 }
 0xbea   : > { %v1299_v57 = vadd.f32 %v1298_v19, %v1297_v50  ;;  %v1292_v58 = vadd.f32 %v1291_v52, %v1290_v51  ;;  %v3088_v51 = vld [vmem:[%s4402_s6 + $0x8] sm:$0xff]  }
 0xbeb   : > { %1409 = vrot.lane.b32.xlu1 %v1407_v54, %s3479_s15 }
 0xbec   : > { %v1300_v59 = vrot.slane %v1299_v57, 2  ;;  %v1293_v60 = vrot.slane %v1292_v58, 2 }
 0xbee   : > { %v1301_v61 = vadd.f32 %v1300_v59, %v1299_v57  ;;  %v1294_v62 = vadd.f32 %v1293_v60, %v1292_v58 }
 0xbef   : > { %1419 = vrot.lane.b32.xlu1 %v1407_v54, %s4366_s11 }
 0xbf0   : > { %v1302_v63 = vrot.slane %v1301_v61, 1  ;;  %v1295_v0 = vrot.slane %v1294_v62, 1 }
 0xbf2   : > { %v1303_v1 = vadd.f32 %v1302_v63, %v1301_v61  ;;  %v1296_v3 = vadd.f32 %v1295_v0, %v1294_v62 }
 0xbf4   : > { %v1305_v5 = vpack.c.bf16 %v1303_v1, %v1303_v1  ;;  %v1304_v6 = vpack.c.bf16 %v1296_v3, %v1296_v3 }
 0xbf6   : > { %v1317_v7 = vunpack.c.l.b16 %v1305_v5  ;;  %v1316_v8 = vunpack.c.l.b16 %v1304_v6 }
 0xbf8   : > { %v1318_v36 = vsel %vm766_vm3, %v1317_v7, %v1316_v8 }
 0xbf9   : > { %v1319_v11 = vpack.c.b16 %v1318_v36, %v1318_v36 }
 0xbfb   : > { %2873 = vmatmul.mubr.msk.bf16.vlgmr.msra.gmra.mrb[4].mxu1 %vm841_vm5, %v1319_v11 }
 0xbfc   : > { %2900 = vmatprep.mubr.msk.bf16.mxu1 %vm3475_vm1, %v3474_v2 }
 0xc5d   : > { %v1410_v24 = vpop.permute.xlu1 %1409 }
 0xc61   : > { %v1420_v35 = vpop.permute.xlu1 %1419 }
 0xcce   : > { %v1381_v14 = vpop.f32.mrb[4].mxu1 }
 0xccf   : > { %v3996_v16 = vadd.f32 %v2710_v13, %v1381_v14  ;;  %v2874_v17 = vpop.f32.mrb[5].mxu1 }
 0xcd0   : > { %v1384_v20 = vpop.f32.mrb[6].mxu1 }
 0xcd1   : > { %v1397_v21 = vadd.f32 %v3914_v55, %v3996_v16  ;;  %v2875_v22 = vpop.f32.mrb[7].mxu1 }
 0xcd3   : > { %v1412_v25 = vadd.f32 %v1410_v24, %v1397_v21 }
 0xcd5   : > { %v2713_v28 = vmul.f32 -1.442695, %v1412_v25 }
 0xcd7   : > { %3129 = vpow2.f32 %v2713_v28 }
 0xce1   : > { %v3130_v30 = vpop.eup %3129 }
 0xce2   : > { %v1416_v32 = vadd.f32 1.0, %v3130_v30 }
 0xce4   : > { %3131 = vrcp.f32 %v1416_v32 }
 0xcee   : > { %v3132_v34 = vpop.eup %3131 }
 0xcef   : > { %v1422_v37 = vmul.f32 %v3132_v34, %v1420_v35  ;;  %v1429_v43 = vsub.f32 1.0, %v3132_v34  ;;  %v1435_v45 = vmul.f32 %v3132_v34, %v3926_v4 }
 0xcf1   : > { %1424 = vrot.lane.b32.xlu0 %v1422_v37, %s3480_s24 }
 0xd63   : > { %v1425_v38 = vpop.permute.xlu0 %1424 }
 0xd64   : > { %v1427_v39 = vadd.f32 %v1425_v38, %v1397_v21 }
 0xd66   : > { %3133 = vtanh.f32 %v1427_v39 }
 0xd70   : > { %v3134_v42 = vpop.eup %3133 }
 0xd71   : > { %1431 = vrot.lane.b32.xlu1 %v3134_v42, %s3479_s15 }
 0xde3   : > { %v1432_v44 = vpop.permute.xlu1 %1431 }
 0xde4   : > { %v1434_v46 = vmul.f32 %v1432_v44, %v1429_v43 }
 0xde6   : > { %v4005_v47 = vadd.f32 %v1435_v45, %v1434_v46 }
 0xde8   : > { %v1437_v48 = vpack.c.bf16 %v4005_v47, %v4005_v47 }
 0xdea   : > { %1443 = vrot.lane.b32.xlu0 %v1437_v48, %s3479_s15 }
 0xe5c   : > { %v1444_v50 = vpop.permute.xlu0 %1443 }
 0xe5d   : > { %2881 = vmatmul.mubr.msk.bf16.vlgmr.msra.gmra.mrb[12].mxu0 %vm630_vm2, %v1444_v50 }
 0xe5e   : > { %2885 = vmatpush3.bf16.msra.mxu0 %v3087_v49  ;;  %2888 = vmatprep.mubr.msk.bf16.mxu0 %vm3475_vm1, %v3474_v2 }
 0xe5f   : > { %2886 = vmatprep.subr.bf16.mxu0 %v3474_v2 }
 0xe62   : > { %2887 = vmatpush3.bf16.msra.mxu0 %v3088_v51 }
 0xe63   : > { %2904 = vmatprep.subr.bf16.mxu0 %v3474_v2 }
 0xe65   : > { %2889 = vmatmul.mubr.msk.bf16.vlgmr.msra.gmra.mrb[16].mxu0 %vm630_vm2, %v1444_v50 }
 0xe66   : > { %2908 = vmatprep.mubr.msk.bf16.mxu0 %vm3475_vm1, %v3474_v2 }
 0xf30   : > { %v4024_v19 = vpop.f32.mrb[12].mxu0 }
 0xf31   : > { %v2882_v52 = vpop.f32.mrb[13].mxu0 }
 0xf32   : > { %v1497_v53 = vpop.f32.mrb[14].mxu0 }
 0xf33   : > { %v2883_v54 = vpop.f32.mrb[15].mxu0 }
 0xf38   : > { %v4026_v57 = vpop.f32.mrb[16].mxu0 }
 0xf39   : > { %v1580_v58 = vrot.slane %v4026_v57, %v3847_v18  ;;  %v2890_v59 = vpop.f32.mrb[17].mxu0 }
 0xf3a   : > { %v1570_v60 = vpop.f32.mrb[18].mxu0 }
 0xf3b   : > { %v1581_v61 = vcombine.high %v1580_v58, %v1580_v58  ;;  %v1588_v62 = vrot.slane %v1580_v58, %v3847_v18  ;;  %v2891_v63 = vpop.f32.mrb[19].mxu0 }
 0xf3c   : > { %v3089_v63 = vld [vmem:[#allocation9] sm:$0xff]  }
 0xf3d   : > { %v1595_v0 = vrot.slane %v1581_v61, %v3847_v18  ;;  %v1601_v1 = vrot.slane %v1588_v62, %v3838_v10  ;;  %2893 = vmatpush3.bf16.msra.mxu1 %v3089_v63 }
 0xf3e   : > { %2894 = vmatprep.subr.bf16.mxu1 %v3474_v2 }
 0xf3f   : > { %v1605_v3 = vrot.slane %v1595_v0, %v3838_v10  ;;  %v1608_v5 = vadd.f32 %v1601_v1, %v3854_v26  ;;  %v1627_v26 = vld [vmem:[%s4403_s9] sm:$0x3]  ;;  %v3090_v0 = vld [vmem:[#allocation9 + $0x8] sm:$0xff]  }
 0xf40   : > { %v1632_v17 = vrot.slane %v1627_v26, %v3838_v10  ;;  %v3091_v1 = vld [vmem:[#allocation9 + $0x10] sm:$0xff]  }
 0xf41   : > { %v1609_v6 = vadd.f32 %v1605_v3, %v3858_v29  ;;  %3135 = vtanh.f32 %v1608_v5  ;;  %v1639_v29 = vrot.slane %v1627_v26, %v3843_v12  ;;  %2895 = vmatpush3.bf16.msra.mxu1 %v3090_v0  ;;  %v3092_v3 = vld [vmem:[#allocation9 + $0x18] sm:$0xff]  }
 0xf42   : > { %2896 = vmatprep.subr.bf16.mxu1 %v3474_v2 }
 0xf43   : > { %3137 = vtanh.f32 %v1609_v6 }
 0xf45   : > { %2897 = vmatpush3.bf16.msra.mxu1 %v3091_v1 }
 0xf46   : > { %2898 = vmatprep.subr.bf16.mxu1 %v3474_v2 }
 0xf49   : > { %2899 = vmatpush3.bf16.msra.mxu1 %v3092_v3  ;;  %v3095_v3 = vld [vmem:[%s4402_s6] sm:$0xff]  }
 0xf4a   : > { %2920 = vmatprep.subr.bf16.mxu1 %v3474_v2 }
 0xf4b   : > { %v3136_v7 = vpop.eup %3135 }
 0xf4c   : > { %v1619_v8 = vmul.f32 %v3136_v7, %v3866_v33 }
 0xf4d   : > { %v3138_v36 = vpop.eup %3137 }
 0xf4e   : > { %v1621_v11 = vsel %vm630_vm2, %v1619_v8, 0.0  ;;  %v1620_v13 = vmul.f32 %v3138_v36, %v3866_v33 }
 0xf4f   : > { %1622 = vadd.xlane.f32.xlu1 %v1621_v11 }
 0xf50   : > { %v1624_v14 = vsel %vm630_vm2, %v1620_v13, 0.0 }
 0xf51   : > { %1625 = vadd.xlane.f32.xlu0 %v1624_v14 }
 0xf60   : > { %1641 = vbcast.lane.b32.xlu1 %v1639_v29, 256 }
 0xf67   : > { %1634 = vbcast.lane.b32.xlu0 %v1632_v17, 256 }
 0xfdc   : > { %v1623_v20 = vpop.xlane.xlu1 %1622 }
 0xfde   : > { %v1626_v21 = vpop.xlane.xlu0 %1625 }
 0xfe0   : > { %v1642_v22 = vpop.permute.xlu1 %1641 }
 0xfe1   : > { %v1646_v24 = vadd.f32 %v1642_v22, %v1626_v21 }
 0xfe2   : > { %v1635_v25 = vpop.permute.xlu0 %1634 }
 0xfe3   : > { %v1645_v33 = vadd.f32 %v1635_v25, %v1623_v20  ;;  %1653 = vperm.xlu0 %3069, %v1646_v24  }
 0xfe5   : > { %1650 = vperm.xlu1 %3070, %v1645_v33  }
0x1062   : > { %v1654_v28 = vpop.permute.xlu0 %1653 }
0x1063   : > { %v1662_v32 = vrot.slane %v1654_v28, %v3836_v9 }
0x1064   : > { %v1651_v30 = vpop.permute.xlu1 %1650 }
0x1065   : > { %v1658_v34 = vrot.slane %v1651_v30, %v3836_v9 }
0x1067   : > { %v1663_v35 = vsel %vm766_vm3, %v1662_v32, %v1658_v34 }
0x1068   : > { %v1665_v37 = vsel %vm769_vm4, %v1663_v35, -inf }
0x1069   : > { %1666 = vmax.xlane.f32.xlu1 %v1665_v37  ;;  %v2728_v37 = vld [vmem:[%s3793_s10 + $0x4] sm:$0x3] }
0x10f6   : > { %v1667_v38 = vpop.xlane.xlu1 %1666 }
0x10f7   : > { %v1672_v39 = vrot.slane %v1667_v38, %v3838_v10  ;;  %v1676_v40 = vrot.slane %v1667_v38, %v3843_v12 }
0x10f9   : > { %v1679_v41 = vsub.f32 %v1645_v33, %v1672_v39  ;;  %v1680_v42 = vsub.f32 %v1646_v24, %v1676_v40 }
0x10fb   : > { %v1681_v43 = vmul.f32 1.442695, %v1679_v41  ;;  %v1683_v44 = vmul.f32 1.442695, %v1680_v42 }
0x10fd   : > { %3139 = vpow2.f32 %v1681_v43 }
0x10fe   : > { %3141 = vpow2.f32 %v1683_v44 }
0x1107   : > { %v3140_v45 = vpop.eup %3139 }
0x1108   : > { %1688 = vperm.xlu0 %3069, %v3140_v45   ;;  %v3142_v46 = vpop.eup %3141 }
0x110c   : > { %1691 = vperm.xlu0 %3069, %v3142_v46  }
0x1187   : > { %v1689_v48 = vpop.permute.xlu0 %1688 }
0x1188   : > { %v1696_v50 = vrot.slane %v1689_v48, %v3836_v9 }
0x118b   : > { %v1692_v49 = vpop.permute.xlu0 %1691 }
0x118c   : > { %v1700_v51 = vrot.slane %v1692_v49, %v3836_v9 }
0x118e   : > { %v1701_v52 = vsel %vm766_vm3, %v1700_v51, %v1696_v50 }
0x118f   : > { %v1703_v53 = vsel %vm769_vm4, %v1701_v52, 0.0 }
0x1190   : > { %1704 = vadd.xlane.f32.xlu0 %v1703_v53 }
0x121d   : > { %v1705_v54 = vpop.xlane.xlu0 %1704 }
0x121e   : > { %3143 = vrcp.f32 %v1705_v54 }
0x1228   : > { %v3144_v58 = vpop.eup %3143 }
0x1229   : > { %v1715_v59 = vrot.slane %v3144_v58, %v3843_v12  ;;  %v1711_v60 = vrot.slane %v3144_v58, %v3838_v10  ;;  %v3093_v58 = vld [vmem:[#allocation11] sm:$0xff]  }
0x122a   : > { %2905 = vmatpush3.bf16.msra.mxu0 %v3093_v58 }
0x122b   : > { %v1719_v61 = vmul.f32 %v3142_v46, %v1715_v59  ;;  %v1718_v62 = vmul.f32 %v3140_v45, %v1711_v60  ;;  %v3094_v59 = vld [vmem:[#allocation11 + $0x8] sm:$0xff]   ;;  %2906 = vmatprep.subr.bf16.mxu0 %v3474_v2 }
0x122d   : > { %1731 = vperm.xlu0 %3069, %v1719_v61   ;;  %1726 = vperm.xlu1 %3070, %v1718_v62  }
0x122e   : > { %2907 = vmatpush3.bf16.msra.mxu0 %v3094_v59 }
0x122f   : > { %2912 = vmatprep.subr.bf16.mxu0 %v3474_v2 }
0x1231   : > { %1850 = vrot.lane.b32.xlu1 %v3887_v15, %s4366_s11 }
0x12ac   : > { %v1732_v5 = vpop.permute.xlu0 %1731  ;;  %v1727_v6 = vpop.permute.xlu1 %1726 }
0x12ad   : > { %v1735_v15 = vmul.f32 %v3898_v27, %v1732_v5  ;;  %v1734_v7 = vmul.f32 %v3895_v23, %v1727_v6  ;;  %v3096_v6 = vld [vmem:[%s4402_s6 + $0x8] sm:$0xff]   ;;  %s3309_s6 = scalar_lea.vmem %s4206_s23, 128 }
0x12ae   : > { %p3310_p7 = scmp.ne.s32.totalorder %s4206_s23, %s3309_s6 }
0x12af   : > { %v1743_v8 = vsel %vm841_vm5, %v1735_v15, 0.0  ;;  %v1736_v36 = vsel %vm841_vm5, %v1734_v7, 0.0 }
0x12b0   : > { %v1744_v11 = vrot.slane %v1743_v8, 4  ;;  %v1737_v13 = vrot.slane %v1736_v36, 4  ;;  %v1851_v14 = vpop.permute.xlu1 %1850  ;;  %p3311_p9 = pnand %p3310_p7, %p3734_p5 }
0x12b1   : > { %v1853_v26 = vadd.f32 %v1851_v14, %v4026_v57 }
0x12b2   : > { %v1745_v29 = vadd.f32 %v1744_v11, %v1743_v8  ;;  %v1738_v17 = vadd.f32 %v1737_v13, %v1736_v36  ;;  %p3312_p0 = pneg %p3311_p9 }
0x12b3   : > { %1855 = vrot.lane.b32.xlu1 %v1853_v26, %s3479_s15 }
0x12b4   : > { %v1746_v20 = vrot.slane %v1745_v29, 2  ;;  %v1739_v21 = vrot.slane %v1738_v17, 2 }
0x12b6   : > { %v1747_v22 = vadd.f32 %v1746_v20, %v1745_v29  ;;  %v1740_v27 = vadd.f32 %v1739_v21, %v1738_v17  ;;  %v2042_v21 = vld [vmem:[#allocation8] sm:$0xff] }
0x12b7   : > { %1865 = vrot.lane.b32.xlu1 %v1853_v26, %s4366_s11 }
0x12b8   : > { %v1748_v23 = vrot.slane %v1747_v22, 1  ;;  %v1741_v24 = vrot.slane %v1740_v27, 1 }
0x12ba   : > { %v1749_v25 = vadd.f32 %v1748_v23, %v1747_v22  ;;  %v1742_v33 = vadd.f32 %v1741_v24, %v1740_v27  ;;  %v2043_v23 = vld [vmem:[#allocation8 + $0x8] sm:$0xff] }
0x12bc   : > { %v1751_v28 = vpack.c.bf16 %v1749_v25, %v1749_v25  ;;  %v1750_v30 = vpack.c.bf16 %v1742_v33, %v1742_v33 }
0x12be   : > { %v1763_v32 = vunpack.c.l.b16 %v1751_v28  ;;  %v1762_v34 = vunpack.c.l.b16 %v1750_v30  ;;  %v2740_v28 = vld [vmem:[%s4404_s16] ss:$0 sm:$0xff] }
0x12c0   : > { %v1764_v57 = vsel %vm766_vm3, %v1763_v32, %v1762_v34 }
0x12c1   : > { %v1765_v35 = vpack.c.b16 %v1764_v57, %v1764_v57 }
0x12c3   : > { %2901 = vmatmul.mubr.msk.bf16.vlgmr.msra.gmra.mrb[8].mxu1 %vm841_vm5, %v1765_v35 }
0x12c4   : > { %2928 = vmatprep.mubr.msk.bf16.mxu1 %vm3475_vm1, %v3474_v2 }
0x1325   : > { %v1856_v44 = vpop.permute.xlu1 %1855 }
0x1329   : > { %v1866_v51 = vpop.permute.xlu1 %1865 }
0x1396   : > { %v1827_v38 = vpop.f32.mrb[8].mxu1 }
0x1397   : > { %v4075_v39 = vadd.f32 %v2728_v37, %v1827_v38  ;;  %v2902_v40 = vpop.f32.mrb[9].mxu1  ;;  %v2073_v37 = vld [vmem:[%s4403_s9] sm:$0x3] }
0x1398   : > { %v1830_v41 = vpop.f32.mrb[10].mxu1  ;;  %v2085_v38 = vrot.slane %v2073_v37, %v3843_v12  ;;  %v2078_v40 = vrot.slane %v2073_v37, %v3838_v10 }
0x1399   : > { %v1843_v42 = vadd.f32 %v3914_v55, %v4075_v39  ;;  %v2903_v43 = vpop.f32.mrb[11].mxu1 }
0x139b   : > { %v1858_v45 = vadd.f32 %v1856_v44, %v1843_v42 }
0x139d   : > { %v2731_v46 = vmul.f32 -1.442695, %v1858_v45 }
0x139f   : > { %3145 = vpow2.f32 %v2731_v46 }
0x13a9   : > { %v3146_v48 = vpop.eup %3145 }
0x13aa   : > { %v1862_v49 = vadd.f32 1.0, %v3146_v48 }
0x13ac   : > { %3147 = vrcp.f32 %v1862_v49 }
0x13b6   : > { %v3148_v50 = vpop.eup %3147 }
0x13b7   : > { %v1868_v52 = vmul.f32 %v3148_v50, %v1866_v51  ;;  %v1875_v60 = vsub.f32 1.0, %v3148_v50  ;;  %v1881_v62 = vmul.f32 %v3148_v50, %v4005_v47 }
0x13b9   : > { %1870 = vrot.lane.b32.xlu0 %v1868_v52, %s3480_s24 }
0x142b   : > { %v1871_v53 = vpop.permute.xlu0 %1870 }
0x142c   : > { %v1873_v54 = vadd.f32 %v1871_v53, %v1843_v42 }
0x142e   : > { %3149 = vtanh.f32 %v1873_v54 }
0x1438   : > { %v3150_v55 = vpop.eup %3149 }
0x1439   : > { %1877 = vrot.lane.b32.xlu1 %v3150_v55, %s3479_s15 }
0x14ab   : > { %v1878_v61 = vpop.permute.xlu1 %1877 }
0x14ac   : > { %v1880_v63 = vmul.f32 %v1878_v61, %v1875_v60 }
0x14ae   : > { %v4084_v0 = vadd.f32 %v1881_v62, %v1880_v63 }
0x14b0   : > { %v1883_v1 = vpack.c.bf16 %v4084_v0, %v4084_v0 }
0x14b2   : > { %1889 = vrot.lane.b32.xlu0 %v1883_v1, %s3479_s15 }
0x1524   : > { %v1890_v5 = vpop.permute.xlu0 %1889 }
0x1525   : > { %2909 = vmatmul.mubr.msk.bf16.vlgmr.msra.gmra.mrb[20].mxu0 %vm630_vm2, %v1890_v5 }
0x1526   : > { %2913 = vmatpush3.bf16.msra.mxu0 %v3095_v3  ;;  %2916 = vmatprep.mubr.msk.bf16.mxu0 %vm3475_vm1, %v3474_v2 }
0x1527   : > { %2914 = vmatprep.subr.bf16.mxu0 %v3474_v2 }
0x152a   : > { %2915 = vmatpush3.bf16.msra.mxu0 %v3096_v6 }
0x152b   : > { %2932 = vmatprep.subr.bf16.mxu0 %v3474_v2 }
0x152d   : > { %2917 = vmatmul.mubr.msk.bf16.vlgmr.msra.gmra.mrb[24].mxu0 %vm630_vm2, %v1890_v5 }
0x152e   : > { %2936 = vmatprep.mubr.msk.bf16.mxu0 %vm3475_vm1, %v3474_v2 }
0x15f8   : > { %v4103_v15 = vpop.f32.mrb[20].mxu0 }
0x15f9   : > { %v2910_v7 = vpop.f32.mrb[21].mxu0 }
0x15fa   : > { %v1943_v8 = vpop.f32.mrb[22].mxu0 }
0x15fb   : > { %v2911_v36 = vpop.f32.mrb[23].mxu0 }
0x1600   : > { %v4105_v11 = vpop.f32.mrb[24].mxu0 }
0x1601   : > { %v2026_v13 = vrot.slane %v4105_v11, %v3847_v18  ;;  %v2918_v14 = vpop.f32.mrb[25].mxu0 }
0x1602   : > { %v2016_v26 = vpop.f32.mrb[26].mxu0 }
0x1603   : > { %v2027_v29 = vcombine.high %v2026_v13, %v2026_v13  ;;  %v2034_v17 = vrot.slane %v2026_v13, %v3847_v18  ;;  %v2919_v20 = vpop.f32.mrb[27].mxu0 }
0x1605   : > { %v2041_v22 = vrot.slane %v2027_v29, %v3847_v18  ;;  %v2047_v27 = vrot.slane %v2034_v17, %v3838_v10 }
0x1607   : > { %v2051_v24 = vrot.slane %v2041_v22, %v3838_v10  ;;  %v2054_v25 = vadd.f32 %v2047_v27, %v2042_v21  ;;  %v3097_v21 = vld [vmem:[#allocation9] sm:$0xff]   ;;  %v3098_v22 = vld [vmem:[#allocation9 + $0x8] sm:$0xff]  }
0x1608   : > { %2921 = vmatpush3.bf16.msra.mxu1 %v3097_v21  ;;  %v2781_v27 = vld [vmem:[#allocation6] sm:$0xff]  }
0x1609   : > { %v2055_v33 = vadd.f32 %v2051_v24, %v2043_v23  ;;  %3151 = vtanh.f32 %v2054_v25  ;;  %2922 = vmatprep.subr.bf16.mxu1 %v3474_v2  ;;  %v2783_v23 = vunpack.c.h.bf16 %v2781_v27  ;;  %v2782_v24 = vunpack.c.l.bf16 %v2781_v27 }
0x160b   : > { %3153 = vtanh.f32 %v2055_v33 }
0x160c   : > { %2923 = vmatpush3.bf16.msra.mxu1 %v3098_v22 }
0x160d   : > { %2924 = vmatprep.subr.bf16.mxu1 %v3474_v2 }
0x1613   : > { %v3152_v30 = vpop.eup %3151 }
0x1614   : > { %v2065_v32 = vmul.f32 %v3152_v30, %v2740_v28 }
0x1615   : > { %v3154_v34 = vpop.eup %3153 }
0x1616   : > { %v2067_v57 = vsel %vm630_vm2, %v2065_v32, 0.0  ;;  %v2066_v35 = vmul.f32 %v3154_v34, %v2740_v28 }
0x1617   : > { %2068 = vadd.xlane.f32.xlu1 %v2067_v57 }
0x1618   : > { %v2070_v18 = vsel %vm630_vm2, %v2066_v35, 0.0 }
0x1619   : > { %2071 = vadd.xlane.f32.xlu0 %v2070_v18 }
0x1628   : > { %2087 = vbcast.lane.b32.xlu1 %v2085_v38, 256 }
0x162f   : > { %2080 = vbcast.lane.b32.xlu0 %v2078_v40, 256 }
0x16a4   : > { %v2069_v41 = vpop.xlane.xlu1 %2068 }
0x16a6   : > { %v2072_v42 = vpop.xlane.xlu0 %2071 }
0x16a8   : > { %v2088_v43 = vpop.permute.xlu1 %2087 }
0x16a9   : > { %v2092_v44 = vadd.f32 %v2088_v43, %v2072_v42 }
0x16aa   : > { %v2081_v45 = vpop.permute.xlu0 %2080 }
0x16ab   : > { %v2091_v46 = vadd.f32 %v2081_v45, %v2069_v41  ;;  %2099 = vperm.xlu0 %3069, %v2092_v44  }
0x16ad   : > { %2096 = vperm.xlu1 %3070, %v2091_v46  }
0x172a   : > { %v2100_v48 = vpop.permute.xlu0 %2099 }
0x172b   : > { %v2108_v50 = vrot.slane %v2100_v48, %v3836_v9 }
0x172c   : > { %v2097_v49 = vpop.permute.xlu1 %2096 }
0x172d   : > { %v2104_v51 = vrot.slane %v2097_v49, %v3836_v9 }
0x172f   : > { %v2109_v52 = vsel %vm766_vm3, %v2108_v50, %v2104_v51 }
0x1730   : > { %v2111_v53 = vsel %vm769_vm4, %v2109_v52, -inf }
0x1731   : > { %2112 = vmax.xlane.f32.xlu1 %v2111_v53 }
0x17be   : > { %v2113_v54 = vpop.xlane.xlu1 %2112 }
0x17bf   : > { %v2118_v58 = vrot.slane %v2113_v54, %v3838_v10  ;;  %v2122_v59 = vrot.slane %v2113_v54, %v3843_v12 }
0x17c1   : > { %v2125_v55 = vsub.f32 %v2091_v46, %v2118_v58  ;;  %v2126_v60 = vsub.f32 %v2092_v44, %v2122_v59  ;;  %v2746_v58 = vld [vmem:[%s3793_s10 + $0x6] sm:$0x3]  ;;  %s2416_s10 = sand.u32 1, %s3586_s14  }
0x17c2   : > { %s4213_s3 = scalar_lea.sflag [#allocation14], %s2416_s10 }
0x17c3   : > { %v2127_v61 = vmul.f32 1.442695, %v2125_v55  ;;  %v2129_v62 = vmul.f32 1.442695, %v2126_v60  ;;  %v2747_v55 = vld [vmem:[%s4406_s19] ss:$0 sm:$0xff] }
0x17c5   : > { %3155 = vpow2.f32 %v2127_v61 }
0x17c6   : > { %3157 = vpow2.f32 %v2129_v62 }
0x17cf   : > { %v3156_v63 = vpop.eup %3155 }
0x17d0   : > { %2134 = vperm.xlu0 %3069, %v3156_v63   ;;  %v3158_v1 = vpop.eup %3157 }
0x17d4   : > { %2137 = vperm.xlu0 %3069, %v3158_v1  }
0x184f   : > { %v2135_v3 = vpop.permute.xlu0 %2134 }
0x1850   : > { %v2142_v6 = vrot.slane %v2135_v3, %v3836_v9 }
0x1853   : > { %v2138_v5 = vpop.permute.xlu0 %2137 }
0x1854   : > { %v2146_v7 = vrot.slane %v2138_v5, %v3836_v9  ;;  %v2748_v9 = vld [vmem:[%s4405_s13] ss:$0 sm:$0xff] }
0x1856   : > { %v2147_v8 = vsel %vm766_vm3, %v2146_v7, %v2142_v6 }
0x1857   : > { %v2149_v36 = vsel %vm769_vm4, %v2147_v8, 0.0 }
0x1858   : > { %2150 = vadd.xlane.f32.xlu0 %v2149_v36 }
0x18e5   : > { %v2151_v13 = vpop.xlane.xlu0 %2150 }
0x18e6   : > { %3159 = vrcp.f32 %v2151_v13 }
0x18f0   : > { %v3160_v14 = vpop.eup %3159 }
0x18f1   : > { %v2161_v26 = vrot.slane %v3160_v14, %v3843_v12  ;;  %v2157_v29 = vrot.slane %v3160_v14, %v3838_v10  ;;  %v3099_v12 = vld [vmem:[#allocation9 + $0x10] sm:$0xff]   ;;  %v3100_v10 = vld [vmem:[#allocation9 + $0x18] sm:$0xff]  }
0x18f2   : > { %2925 = vmatpush3.bf16.msra.mxu1 %v3099_v12 }
0x18f3   : > { %v2165_v17 = vmul.f32 %v3158_v1, %v2161_v26  ;;  %v2164_v20 = vmul.f32 %v3156_v63, %v2157_v29  ;;  %2926 = vmatprep.subr.bf16.mxu1 %v3474_v2 }
0x18f5   : > { %2177 = vperm.xlu0 %3069, %v2165_v17   ;;  %2172 = vperm.xlu1 %3070, %v2164_v20   ;;  %v3101_v20 = vld [vmem:[#allocation11] sm:$0xff]  }
0x18f6   : > { %2927 = vmatpush3.bf16.msra.mxu1 %v3100_v10  ;;  %2933 = vmatpush3.bf16.msra.mxu0 %v3101_v20 }
0x18f7   : > { %2934 = vmatprep.subr.bf16.mxu0 %v3474_v2 }
0x18f9   : > { %2296 = vrot.lane.b32.xlu1 %v2748_v9, %s4366_s11  ;;  %v3102_v9 = vld [vmem:[#allocation11 + $0x8] sm:$0xff]  }
0x18fa   : > { %2935 = vmatpush3.bf16.msra.mxu0 %v3102_v9 }
0x1974   : > { %v2178_v25 = vpop.permute.xlu0 %2177  ;;  %v2173_v33 = vpop.permute.xlu1 %2172 }
0x1975   : > { %v2181_v28 = vmul.f32 %v2783_v23, %v2178_v25  ;;  %v2180_v30 = vmul.f32 %v2782_v24, %v2173_v33 }
0x1977   : > { %v2189_v32 = vsel %vm841_vm5, %v2181_v28, 0.0  ;;  %v2182_v34 = vsel %vm841_vm5, %v2180_v30, 0.0 }
0x1978   : > { %v2190_v57 = vrot.slane %v2189_v32, 4  ;;  %v2183_v35 = vrot.slane %v2182_v34, 4  ;;  %v2297_v18 = vpop.permute.xlu1 %2296 }
0x1979   : > { %v2299_v37 = vadd.f32 %v2297_v18, %v4105_v11 }
0x197a   : > { %v2191_v38 = vadd.f32 %v2190_v57, %v2189_v32  ;;  %v2184_v40 = vadd.f32 %v2183_v35, %v2182_v34 }
0x197b   : > { %2301 = vrot.lane.b32.xlu1 %v2299_v37, %s3479_s15 }
0x197c   : > { %v2192_v41 = vrot.slane %v2191_v38, 2  ;;  %v2185_v42 = vrot.slane %v2184_v40, 2 }
0x197e   : > { %v2193_v43 = vadd.f32 %v2192_v41, %v2191_v38  ;;  %v2186_v44 = vadd.f32 %v2185_v42, %v2184_v40 }
0x197f   : > { %2311 = vrot.lane.b32.xlu1 %v2299_v37, %s4366_s11 }
0x1980   : > { %v2194_v45 = vrot.slane %v2193_v43, 1  ;;  %v2187_v46 = vrot.slane %v2186_v44, 1 }
0x1982   : > { %v2195_v48 = vadd.f32 %v2194_v45, %v2193_v43  ;;  %v2188_v49 = vadd.f32 %v2187_v46, %v2186_v44 }
0x1984   : > { %v2197_v50 = vpack.c.bf16 %v2195_v48, %v2195_v48  ;;  %v2196_v51 = vpack.c.bf16 %v2188_v49, %v2188_v49 }
0x1986   : > { %v2209_v52 = vunpack.c.l.b16 %v2197_v50  ;;  %v2208_v53 = vunpack.c.l.b16 %v2196_v51 }
0x1988   : > { %v2210_v11 = vsel %vm766_vm3, %v2209_v52, %v2208_v53 }
0x1989   : > { %v2211_v54 = vpack.c.b16 %v2210_v11, %v2210_v11 }
0x198b   : > { %2929 = vmatmul.mubr.msk.bf16.vlgmr.msra.gmra.mrb[12].mxu1 %vm841_vm5, %v2211_v54 }
0x19ed   : > { %v2302_v3 = vpop.permute.xlu1 %2301 }
0x19f1   : > { %v2312_v13 = vpop.permute.xlu1 %2311 }
0x1a5e   : > { %v2273_v59 = vpop.f32.mrb[12].mxu1 }
0x1a5f   : > { %v4153_v60 = vadd.f32 %v2746_v58, %v2273_v59  ;;  %v2930_v61 = vpop.f32.mrb[13].mxu1 }
0x1a60   : > { %v2276_v62 = vpop.f32.mrb[14].mxu1 }
0x1a61   : > { %v2289_v63 = vadd.f32 %v2747_v55, %v4153_v60  ;;  %v2931_v1 = vpop.f32.mrb[15].mxu1 }
0x1a63   : > { %v2304_v5 = vadd.f32 %v2302_v3, %v2289_v63 }
0x1a65   : > { %v2749_v6 = vmul.f32 -1.442695, %v2304_v5 }
0x1a67   : > { %3161 = vpow2.f32 %v2749_v6 }
0x1a71   : > { %v3162_v7 = vpop.eup %3161 }
0x1a72   : > { %v2308_v8 = vadd.f32 1.0, %v3162_v7 }
0x1a74   : > { %3163 = vrcp.f32 %v2308_v8 }
0x1a7e   : > { %v3164_v36 = vpop.eup %3163 }
0x1a7f   : > { %v2314_v14 = vmul.f32 %v3164_v36, %v2312_v13  ;;  %v2321_v21 = vsub.f32 1.0, %v3164_v36  ;;  %v2327_v12 = vmul.f32 %v3164_v36, %v4084_v0 }
0x1a81   : > { %2316 = vrot.lane.b32.xlu0 %v2314_v14, %s3480_s24  ;;  %s2766_s24 = sshll.u32 %s3453_s28, 7 }
0x1a82   : > { %s4204_s1 = scalar_lea.hbm %s4407_s25, %s2766_s24  ;;  %s3315_s25 = scalar_lea.vmem %s3314_s21, 256 }
0x1a83   : > { %p3317_p13 = scmp.lt.s32.totalorder %s3315_s25, %s3309_s6 }
0x1a85   : > { %p3318_p4 = por %p3317_p13, %p3316_p2 }
0x1a87   : > { %p3319_p12 = pnand %p3318_p4, %p3312_p0 }
0x1af3   : > { %v2317_v26 = vpop.permute.xlu0 %2316 }
0x1af4   : > { %v2319_v29 = vadd.f32 %v2317_v26, %v2289_v63 }
0x1af6   : > { %3165 = vtanh.f32 %v2319_v29 }
0x1b00   : > { %v3166_v17 = vpop.eup %3165 }
0x1b01   : > { %2323 = vrot.lane.b32.xlu1 %v3166_v17, %s3479_s15 }
0x1b05   : > { %1056 = vrot.lane.b32.xlu1 %v3945_v31, %s3479_s15 }
0x1b09   : > { %1947 = vrot.lane.b32.xlu1 %v4103_v15, %s3479_s15 }
0x1b73   : > { %v2324_v22 = vpop.permute.xlu1 %2323 }
0x1b74   : > { %v2326_v10 = vmul.f32 %v2324_v22, %v2321_v21 }
0x1b76   : > { %v2328_v27 = vadd.f32 %v2327_v12, %v2326_v10 }
0x1b77   : > { %v1057_v23 = vpop.permute.xlu1 %1056 }
0x1b78   : > { %v1059_v24 = vadd.f32 %v1057_v23, %v3916_v56  ;;  %v2329_v31 = vpack.c.bf16 %v2328_v27, %v2328_v27 }
0x1b7a   : > { %2335 = vrot.lane.b32.xlu0 %v2329_v31, %s3479_s15  ;;  %1067 = vrot.lane.b32.xlu1 %v1059_v24, %s4366_s11 }
0x1b7b   : > { %v1948_v15 = vpop.permute.xlu1 %1947 }
0x1b7c   : > { %v1950_v2 = vadd.f32 %v1948_v15, %v4075_v39 }
0x1b7e   : > { %1501 = vrot.lane.b32.xlu0 %v4024_v19, %s3479_s15  ;;  %1958 = vrot.lane.b32.xlu1 %v1950_v2, %s4366_s11 }
0x1b82   : > { %1061 = vrot.lane.b32.xlu1 %v3926_v4, %s3479_s15 }
0x1b86   : > { %1952 = vrot.lane.b32.xlu1 %v4084_v0, %s3479_s15 }
0x1bec   : > { %v2336_v56 = vpop.permute.xlu0 %2335  ;;  %v1068_v25 = vpop.permute.xlu1 %1067 }
0x1bed   : > { %1070 = vst.msk [vmem:[%s3809_s20] sm:$0x3] %vm1064_vm6, %v1068_v25  ;;  %2937 = vmatmul.mubr.msk.bf16.vlgmr.msra.gmra.mrb[28].mxu0 %vm630_vm2, %v2336_v56 }
0x1bf0   : > { %v1959_v33 = vpop.permute.xlu1 %1958  ;;  %v1502_v4 = vpop.permute.xlu0 %1501 }
0x1bf1   : > { %2736 = vst.msk [vmem:[%s3809_s20 + $0x4] sm:$0x3] %vm1064_vm6, %v1959_v33  ;;  %v1504_v32 = vadd.f32 %v1502_v4, %v3996_v16 }
0x1bf4   : > { %v1062_v39 = vpop.permute.xlu1 %1061 }
0x1bf5   : > { %1065 = vst.msk [vmem:[%s3807_s18] sm:$0x3] %vm1064_vm6, %v1062_v39 }
0x1bf8   : > { %v1953_v19 = vpop.permute.xlu1 %1952 }
0x1bf9   : > { %2735 = vst.msk [vmem:[%s3807_s18 + $0x4] sm:$0x3] %vm1064_vm6, %v1953_v19 }
0x1cc0   : > { %v2386_v0 = vpop.f32.mrb[28].mxu0 }
0x1cc1   : > { %2393 = vrot.lane.b32.xlu0 %v2386_v0, %s3479_s15  ;;  %v2938_v28 = vpop.f32.mrb[29].mxu0 }
0x1cc2   : > { %v2389_v30 = vpop.f32.mrb[30].mxu0 }
0x1cc3   : > { %v2939_v34 = vpop.f32.mrb[31].mxu0 }
0x1cc5   : > { %1512 = vrot.lane.b32.xlu0 %v1504_v32, %s4366_s11 }
0x1cc9   : > { %1506 = vrot.lane.b32.xlu0 %v4005_v47, %s3479_s15 }
0x1d33   : > { %v2394_v57 = vpop.permute.xlu0 %2393 }
0x1d34   : > { %v2396_v35 = vadd.f32 %v2394_v57, %v4153_v60 }
0x1d36   : > { %2404 = vrot.lane.b32.xlu0 %v2396_v35, %s4366_s11  ;;  %s3481_s11 = smov [#allocation15]  }
0x1d37   : > { %v1513_v18 = vpop.permute.xlu0 %1512  ;;  %s4211_s2 = sshll.u32 %s3481_s11, 4  ;;  %s4252_s2 = int_to_ptr.vmem [resolvable:$true] %s4211_s2 }
0x1d38   : > { %2718 = vst.msk [vmem:[%s3809_s20 + $0x2] sm:$0x3] %vm1064_vm6, %v1513_v18 }
0x1d3a   : > { %2398 = vrot.lane.b32.xlu0 %v2328_v27, %s3479_s15 }
0x1d3b   : > { %v1507_v16 = vpop.permute.xlu0 %1506 }
0x1d3c   : > { %2717 = vst.msk [vmem:[%s3807_s18 + $0x2] sm:$0x3] %vm1064_vm6, %v1507_v16 }
0x1da8   : > { %v2405_v47 = vpop.permute.xlu0 %2404 }
0x1da9   : > { %2754 = vst.msk [vmem:[%s3809_s20 + $0x6] sm:$0x3] %vm1064_vm6, %v2405_v47 }
0x1daa   : > { %3322 = shalt.err (!%p3319_p12)
}
0x1dab   : > { %s3323_s20 = scalar_lea.hbm %s4204_s1, 128  ;;  %s3327_s4 = scalar_lea.hbm %s4408_s0, 256 }
0x1dac   : > { %p3324_p1 = scmp.ne.s32.totalorder %s4204_s1, %s3323_s20  ;;  %p3328_p6 = scmp.lt.u32.totalorder %s4204_s1, %s4408_s0 }
0x1dad   : > { %p3329_p10 = scmp.lt.u32.totalorder %s3327_s4, %s3323_s20  ;;  %p3331_p7 = scmp.lt.u32.totalorder %s3323_s20, %s4204_s1 }
0x1dae   : > { %p3325_p11 = pnand %p3324_p1, %p3734_p5 }
0x1daf   : > { %p3330_p3 = por %p3329_p10, %p3328_p6 }
0x1db0   : > { %p3326_p8 = pneg %p3325_p11 }
0x1db1   : > { %p3332_p9 = por %p3331_p7, %p3330_p3 }
0x1db3   : > { %p3333_p0 = pnand %p3332_p9, %p3326_p8 }
0x1db5   : > { %3336 = shalt.err (!%p3333_p0)
}
0x1db6   : > { %s3483_s6 = smov 2   ;;  %s4409_s25 = smov 32   ;;  %v2399_v37 = vpop.permute.xlu0 %2398 }
0x1db7   : > { %2959 = dma.vmem_to_hbm [thread:$0]  (%p3734_p5), %s4206_s23, 128, %s4204_s1, %s4213_s3, %s4409_s25, %s4409_s25, %s3483_s6   ;;  %2409 = vst.msk [vmem:[#allocation2] sm:$0x3] %vm1064_vm6, %v2399_v37  ;;  %2410 = vst.msk [vmem:[#allocation15] sm:$0x3] %vm1064_vm6, %v2399_v37 }
0x1db8   : > { %s4410_s11 = sld [smem:[#allocation33_spill]]  ;;  %s4411_s4 = sshll.u32 %s3807_s18, 4  ;;  %2753 = vst.msk [vmem:[%s3807_s18 + $0x6] sm:$0x3] %vm1064_vm6, %v2399_v37  ;;  %s4249_s4 = int_to_ptr.vmem [resolvable:$true] %s4411_s4 }
0x1db9   : > { %s2412_s1 = scalar_lea.sflag [#allocation5], %s3789_s17  ;;  %s3337_s3 = scalar_lea.vmem %s4249_s4, 128 }
0x1dba   : > { %p3338_p2 = scmp.ne.s32.totalorder %s4249_s4, %s3337_s3  ;;  %s3484_s28 = smov [#allocation12]  }
0x1dbc   : > { %p3339_p13 = pnand %p3338_p2, %p3734_p5 }
0x1dbe   : > { %s4245_s10 = scalar_lea.hbm %s4410_s11, %s2766_s24  ;;  %p3340_p4 = pneg %p3339_p13 }
0x1dbf   : > { %s3341_s24 = sshll.u32 %s3484_s28, 4  ;;  %s3342_s24 = int_to_ptr.vmem [resolvable:$false] %s3341_s24 }
0x1dc0   : > { %s3343_s23 = scalar_lea.vmem %s3342_s24, 256  ;;  %p3344_p12 = scmp.lt.s32.totalorder %s4249_s4, %s3342_s24 }
0x1dc1   : > { %p3345_p1 = scmp.lt.s32.totalorder %s3343_s23, %s3337_s3 }
0x1dc3   : > { %p3346_p11 = por %p3345_p1, %p3344_p12 }
0x1dc5   : > { %p3347_p8 = pnand %p3346_p11, %p3340_p4 }
0x1dc7   : > { %3350 = shalt.err (!%p3347_p8)
}
0x1dc8   : > { %s3351_s18 = scalar_lea.hbm %s4245_s10, 128  ;;  %s3355_s20 = scalar_lea.hbm %s4410_s11, 256 }
0x1dc9   : > { %p3352_p6 = scmp.ne.s32.totalorder %s4245_s10, %s3351_s18  ;;  %p3356_p7 = scmp.lt.u32.totalorder %s4245_s10, %s4410_s11 }
0x1dca   : > { %p3357_p9 = scmp.lt.u32.totalorder %s3355_s20, %s3351_s18  ;;  %p3359_p2 = scmp.lt.u32.totalorder %s3351_s18, %s4245_s10 }
0x1dcb   : > { %p3353_p10 = pnand %p3352_p6, %p3734_p5 }
0x1dcc   : > { %p3358_p0 = por %p3357_p9, %p3356_p7 }
0x1dcd   : > { %p3354_p3 = pneg %p3353_p10 }
0x1dce   : > { %p3360_p13 = por %p3359_p2, %p3358_p0 }
0x1dd0   : > { %p3361_p4 = pnand %p3360_p13, %p3354_p3 }
0x1dd2   : > { %3364 = shalt.err (!%p3361_p4)
}
0x1dd3   : > { %2958 = dma.vmem_to_hbm [thread:$0]  (%p3734_p5), %s4249_s4, 128, %s4245_s10, %s2412_s1, %s4409_s25, %s4409_s25, %s3483_s6  }
0x1dd4   : > { %s3365_s3 = scalar_lea.vmem %s4252_s2, 32  ;;  %p4412_p1 = scmp.eq.s32.totalorder %s3586_s14, 1 }
0x1dd5   : > { %p3366_p12 = scmp.ne.s32.totalorder %s4252_s2, %s3365_s3  ;;  %p3372_p6 = scmp.lt.s32.totalorder %s4252_s2, %s4252_s2 }
0x1dd6   : > { %p3373_p10 = scmp.lt.s32.totalorder %s3365_s3, %s3365_s3 }
0x1dd7   : > { %p3367_p11 = pnand %p3366_p12, %p4412_p1 }
0x1dd8   : > { %p3374_p3 = por %p3373_p10, %p3372_p6 }
0x1dd9   : > { %p3368_p8 = pneg %p3367_p11 }
0x1ddb   : > { %p3375_p7 = pnand %p3374_p3, %p3368_p8 }
0x1ddd   : > { %3378 = shalt.err (!%p3375_p7)
}
0x1dde   : > { %s4413_s23 = sld [smem:[#allocation35_spill]]  ;;  %p4414_p9 = pmov %p4412_p1 }
0x1de4   : > { %s3379_s18 = scalar_lea.hbm %s4413_s23, 32 }
0x1de5   : > { %p3380_p5 = scmp.ne.s32.totalorder %s4413_s23, %s3379_s18  ;;  %p3385_p13 = scmp.lt.u32.totalorder %s3379_s18, %s4413_s23 }
0x1de7   : > { %p3381_p0 = pnand %p3380_p5, %p4414_p9 }
0x1de9   : > { %p3382_p2 = pneg %p3381_p0 }
0x1deb   : > { %p3387_p4 = pnand %p3385_p13, %p3382_p2 }
0x1ded   : > { %3390 = shalt.err (!%p3387_p4)
}
0x1dee   : > { %p4415_p12 = pmov %p4412_p1 }
0x1df0   : > { %2961 = dma.vmem_to_hbm [thread:$0]  (%p4415_p12), %s4252_s2, 32, %s4413_s23, [#allocation14]  }
0x1df1   : > { %3428 = dma.done.wait (%p4412_p1), [#allocation14], 32   ;;  %p4416_p11 = pmov %p4412_p1 }
0x1df3   : > { %3430 = vsyncadd (%p4416_p11), [#allocation14], 4294967264 }
0x1df4 PF: > { %s4417_s1 = sld [smem:[#allocation22_spill]]  ;;  %s4418_s20 = sld [smem:[#allocation23_spill]] }
0x1df5   : > { %p4420_p6 = scmp.ge.s32.totalorder %s3461_s30, 2 }
0x1dfa   : > { %s2480_s28 = sand.u32 1, %s4417_s1   ;;  %p4419_p8 = scmp.ne.s32.totalorder %s4418_s20, 0 }
0x1dfb   : > { %s2481_s24 = scalar_lea.sflag [#allocation5], %s2480_s28 }
0x1dfc   : > { %p2984_p10 = pnand %p4420_p6, %p4419_p8 }
0x1dfe   : > { %3432 = dma.done.wait (!%p2984_p10), %s2481_s24, 128  }
0x1dff   : > { %3434 = vsyncadd (!%p2984_p10), %s2481_s24, 4294967168  ;;  %s4421_s3 = sadd.s32 4294967294, %s3461_s30  }
0x1e00   : > { %s2489_s5 = sand.u32 1, %s4421_s3  }
0x1e01   : > { %s2490_s2 = scalar_lea.sflag [#allocation14], %s2489_s5 }
0x1e02   : > { %3436 = dma.done.wait (!%p2984_p10), %s2490_s2, 128  }
0x1e03   : > { %3438 = vsyncadd (!%p2984_p10), %s2490_s2, 4294967168  ;;  %s35_s30 = sadd.s32 1, %s3461_s30   ;;  %s4422_s25 = smov %s3445_s26 }
0x1e04   : > { %p32_p3 = scmp.ge.s32.totalorder %s35_s30, 4   ;;  %s4423_s26 = smov %s3449_s27 }
0x1e05   : > { %s4424_s27 = smov %s3743_s22  ;;  %s4425_s28 = smov %s3457_s29 }
0x1e06   : > { %s4426_s29 = smov %s4428_s12  ;;  %34 = sbr.rel (!%p32_p3) target bundleno = 23 (0x17), region = 172 }
0x1e0d   :  { %2495 = vsyncpa [#allocation4], 1 }
0x1e0e   :  { %2497 = vsyncpa [#allocation4 + $0x1], 1 }
0x1e0f   :  { %2498 = vsyncpa [#allocation7], 1 }
0x1e10   :  { %2499 = vsyncpa [#allocation10], 1 }
0x1e11   :  { %2500 = vsyncpa [#allocation5], 1 }
0x1e12   :  { %2502 = vsyncpa [#allocation5 + $0x1], 1 }
0x1e13   :  { %2503 = vsyncpa [#allocation14], 1 }
0x1e14   :  { %2505 = vsyncpa [#allocation14 + $0x1], 1 }

</bundles_post_ra>
